<compile_context>
chip_gen: v7x
topology: tpu7x:2x2x1
jax: 0.10.0
libtpu: 0.0.40
codegen_flags: <defaults>
</compile_context>

<pallas_src>
import functools
import numpy as np
import jax
import jax.numpy as jnp
from jax.experimental import pallas as pl
from jax.experimental.pallas import tpu as pltpu


def _round_up(x, m):
    return (x + m - 1) // m * m


def _pad2(m, rows, cols):
    r, c = m.shape
    return jnp.zeros((rows, cols), m.dtype).at[:r, :c].set(m)


# --------------- layer 1: ChebConv(k=2) + ReLU (also emits h @ V1) ---------------

def _layer1_kernel(a_ref, xs_ref, xr_ref, w0p_ref, w1_ref, b1_ref, v1_ref,
                   h_ref, hv1_ref, acc_ref, *, re):
    k = pl.program_id(1)

    @pl.when(k == 0)
    def _():
        acc_ref[...] = jnp.zeros_like(acc_ref)

    # accumulate (A_hat @ X) for this row tile  (bf16 x bf16 -> f32 MXU)
    acc_ref[...] += jnp.dot(a_ref[...], xs_ref[...],
                            preferred_element_type=jnp.float32)

    @pl.when(k == pl.num_programs(1) - 1)
    def _():
        x_row = xr_ref[...].astype(jnp.float32)
        h = (jnp.dot(x_row, w0p_ref[...], preferred_element_type=jnp.float32)
             - re * jnp.dot(acc_ref[...], w1_ref[...],
                            preferred_element_type=jnp.float32)
             + b1_ref[...])
        h = jnp.maximum(h, 0.0)                         # ReLU
        # Dropout: module is evaluated in inference mode (training=False) -> identity.
        # TODO(synk): training-mode dropout (pltpu.prng_random_bits mask) not emitted.
        h_ref[...] = h
        # pre-multiply by the layer-2 Chebyshev weight so layer 2 streams only [N, Cpad]
        hv1_ref[...] = jnp.dot(h, v1_ref[...],
                               preferred_element_type=jnp.float32
                               ).astype(hv1_ref.dtype)


# --------------- layer 2: ChebConv(k=2) + log_softmax ----------------------------

def _layer2_kernel(a_ref, hv1s_ref, hr_ref, v0p_ref, b2_ref,
                   out_ref, acc_ref, *, re, num_classes):
    k = pl.program_id(1)

    @pl.when(k == 0)
    def _():
        acc_ref[...] = jnp.zeros_like(acc_ref)

    # accumulate A_hat @ (h @ V1) for this row tile
    acc_ref[...] += jnp.dot(a_ref[...], hv1s_ref[...],
                            preferred_element_type=jnp.float32)

    @pl.when(k == pl.num_programs(1) - 1)
    def _():
        z = (jnp.dot(hr_ref[...], v0p_ref[...],
                     preferred_element_type=jnp.float32)
             - re * acc_ref[...]
             + b2_ref[...])
        # mask lane-padding class columns so they do not pollute the softmax
        col = jax.lax.broadcasted_iota(jnp.int32, z.shape, 1)
        z = jnp.where(col < num_classes, z, -1e30)
        m = jnp.max(z, axis=1, keepdims=True)
        zs = z - m
        lse = jnp.log(jnp.sum(jnp.exp(zs), axis=1, keepdims=True))
        out_ref[...] = zs - lse


# --------------- wrapper ----------------------------------------------------------

def chebynet_forward(x, a_hat, lambda_max, params, *, block_n=256):
    """block_n: row / reduction tile of A_hat (multiple of 128).
    ~512-1024 is good on v6e (128 MiB VMEM); keep <=256 on v7x (64 MiB VMEM)."""
    assert block_n % 128 == 0
    n, f = x.shape
    hdim = params["w10"].shape[1]
    c = params["w20"].shape[1]
    re = 2.0 / float(lambda_max)

    fp = _round_up(f, 128)
    hp = _round_up(hdim, 128)
    cp = _round_up(c, 128)
    tn = min(block_n, _round_up(n, 128))
    npad = _round_up(n, tn)
    gm, gk = npad // tn, npad // tn

    # zero-padded bf16 adjacency (streamed twice -> dominant HBM traffic) + features
    a_bf = _pad2(a_hat.astype(jnp.float32), npad, npad).astype(jnp.bfloat16)
    x_bf = _pad2(x.astype(jnp.float32), npad, fp).astype(jnp.bfloat16)

    # folded / padded weights (f32)
    w0p = _pad2(params["w10"] + (re - 1.0) * params["w11"], fp, hp)
    w1p = _pad2(params["w11"], fp, hp)
    b1p = _pad2(params["b1"], 1, hp)
    v0p = _pad2(params["w20"] + (re - 1.0) * params["w21"], hp, cp)
    v1p = _pad2(params["w21"], hp, cp)
    b2p = _pad2(params["b2"], 1, cp)

    cparams = pltpu.CompilerParams(
        dimension_semantics=("parallel", "arbitrary"),   # rows across TCs, K sequential
        vmem_limit_bytes=48 * 1024 * 1024,               # > default 32 MiB, < v7x 64 MiB
    )

    def resident(shape):
        return pl.BlockSpec(shape, lambda i, k: (0, 0))

    # ---------------- layer 1 + ReLU ----------------
    cost1 = pl.CostEstimate(
        flops=2 * npad * npad * fp + 4 * npad * fp * hp + 2 * npad * hp * cp,
        transcendentals=0,
        bytes_accessed=2 * npad * npad + 4 * npad * fp
        + 4 * (2 * fp * hp + hp * cp + hp) + 4 * npad * hp + 2 * npad * cp,
    )
    h_f32, hv1_bf = pl.pallas_call(
        functools.partial(_layer1_kernel, re=re),
        out_shape=(jax.ShapeDtypeStruct((npad, hp), jnp.float32),
                   jax.ShapeDtypeStruct((npad, cp), jnp.bfloat16)),
        grid_spec=pltpu.PrefetchScalarGridSpec(
            num_scalar_prefetch=0,
            grid=(gm, gk),
            in_specs=[
                pl.BlockSpec((tn, tn), lambda i, k: (i, k)),   # A_hat tile
                pl.BlockSpec((tn, fp), lambda i, k: (k, 0)),   # X streamed over K
                pl.BlockSpec((tn, fp), lambda i, k: (i, 0)),   # X row tile (epilogue)
                resident((fp, hp)),                            # W0' = W10 + (re-1) W11
                resident((fp, hp)),                            # W11
                resident((1, hp)),                             # b1
                resident((hp, cp)),                            # V1 = W21 (layer-2 Cheb)
            ],
            out_specs=(pl.BlockSpec((tn, hp), lambda i, k: (i, 0)),
                       pl.BlockSpec((tn, cp), lambda i, k: (i, 0))),
            scratch_shapes=[pltpu.VMEM((tn, fp), jnp.float32)],
        ),
        compiler_params=cparams,
        cost_estimate=cost1,
    )(a_bf, x_bf, x_bf, w0p, w1p, b1p, v1p)

    # ---------------- layer 2 + log_softmax ----------------
    cost2 = pl.CostEstimate(
        flops=2 * npad * npad * cp + 2 * npad * hp * cp,
        transcendentals=npad * cp + npad,
        bytes_accessed=2 * npad * npad + 2 * npad * cp + 4 * npad * hp
        + 4 * (hp * cp + cp) + 4 * npad * cp,
    )
    out_pad = pl.pallas_call(
        functools.partial(_layer2_kernel, re=re, num_classes=c),
        out_shape=jax.ShapeDtypeStruct((npad, cp), jnp.float32),
        grid_spec=pltpu.PrefetchScalarGridSpec(
            num_scalar_prefetch=0,
            grid=(gm, gk),
            in_specs=[
                pl.BlockSpec((tn, tn), lambda i, k: (i, k)),   # A_hat tile
                pl.BlockSpec((tn, cp), lambda i, k: (k, 0)),   # h@V1 streamed over K
                pl.BlockSpec((tn, hp), lambda i, k: (i, 0)),   # h row tile (epilogue)
                resident((hp, cp)),                            # V0' = W20 + (re-1) W21
                resident((1, cp)),                             # b2
            ],
            out_specs=pl.BlockSpec((tn, cp), lambda i, k: (i, 0)),
            scratch_shapes=[pltpu.VMEM((tn, cp), jnp.float32)],
        ),
        compiler_params=cparams,
        cost_estimate=cost2,
    )(a_bf, hv1_bf, h_f32, v0p, b2p)

    return out_pad[:n, :c]


def reference_forward(x, a_hat, lambda_max, params):
    re = 2.0 / lambda_max
    tx1 = (re - 1.0) * x - re * (a_hat @ x)
    h = x @ params["w10"] + tx1 @ params["w11"] + params["b1"]
    h = jnp.maximum(h, 0.0)
    tx1b = (re - 1.0) * h - re * (a_hat @ h)
    z = h @ params["w20"] + tx1b @ params["w21"] + params["b2"]
    return jax.nn.log_softmax(z, axis=1)


if __name__ == "__main__":
    # Small synthetic graph / features consistent with the module.
    N = 300         # nodes (padded to 384 -> 3x3 grid with block_n=128)
    F_IN = 8        # num_features
    HIDDEN = 32     # args.hidden
    CLASSES = 4     # num_classes

    key = jax.random.PRNGKey(0)
    k_adj, k_feat, k_w10, k_w11, k_w20, k_w21 = jax.random.split(key, 6)

    # Deterministic undirected random graph (no self loops), dense adjacency.
    upper = (jax.random.uniform(k_adj, (N, N)) < 0.3).astype(jnp.float32)
    adj = jnp.triu(upper, 1)
    adj = adj + adj.T

    # Symmetric normalization with degree clamped to >= 1 (DGL ChebConv behavior).
    deg = jnp.clip(jnp.sum(adj, axis=1), 1.0, None)
    d_inv_sqrt = 1.0 / jnp.sqrt(deg)
    a_hat = adj * d_inv_sqrt[:, None] * d_inv_sqrt[None, :]

    # lambda_max of the normalized Laplacian L = I - A_hat (dgl.laplacian_lambda_max).
    lap = np.eye(N, dtype=np.float32) - np.asarray(a_hat)
    lambda_max = float(np.max(np.linalg.eigvalsh(lap)))

    # Node features.
    x = jax.random.normal(k_feat, (N, F_IN), dtype=jnp.float32)

    # Deterministic parameter init (Glorot-ish scaling), biases zero.
    def glorot(k, shape):
        fan_in, fan_out = shape
        scale = jnp.sqrt(2.0 / (fan_in + fan_out))
        return jax.random.normal(k, shape, dtype=jnp.float32) * scale

    params = {
        "w10": glorot(k_w10, (F_IN, HIDDEN)),
        "w11": glorot(k_w11, (F_IN, HIDDEN)),
        "b1":  jnp.zeros((1, HIDDEN), jnp.float32),
        "w20": glorot(k_w20, (HIDDEN, CLASSES)),
        "w21": glorot(k_w21, (HIDDEN, CLASSES)),
        "b2":  jnp.zeros((1, CLASSES), jnp.float32),
    }

    out = chebynet_forward(x, a_hat, lambda_max, params, block_n=128)
    out = jax.block_until_ready(out)

    ref = reference_forward(x, a_hat, lambda_max, params)
    # bf16 streaming of A_hat / X / h@V1 (f32 accumulation) -> loosened tolerance.
    np.testing.assert_allclose(np.asarray(out), np.asarray(ref), rtol=5e-2, atol=5e-2)

    print("KERNEL_OK")
</pallas_src>

<mosaic_0001>
module attributes {stable_mosaic.version = 11 : i64} {
  func.func @_layer1_kernel(%arg0: i32, %arg1: i32, %arg2: memref<128x128xbf16, #tpu.memory_space<vmem>>, %arg3: memref<128x128xbf16, #tpu.memory_space<vmem>>, %arg4: memref<128x128xbf16, #tpu.memory_space<vmem>>, %arg5: memref<128x128xf32, #tpu.memory_space<vmem>>, %arg6: memref<128x128xf32, #tpu.memory_space<vmem>>, %arg7: memref<1x128xf32, #tpu.memory_space<vmem>>, %arg8: memref<128x128xf32, #tpu.memory_space<vmem>>, %arg9: memref<128x128xf32, #tpu.memory_space<vmem>>, %arg10: memref<128x128xbf16, #tpu.memory_space<vmem>>, %arg11: memref<128x128xf32, #tpu.memory_space<vmem>>) attributes {dimension_semantics = [#tpu.dimension_semantics<parallel>, #tpu.dimension_semantics<arbitrary>], iteration_bounds = array<i64: 3, 3>, scalar_prefetch = 0 : i64, scratch_operands = 1 : i64, tpu.core_type = #tpu.core_type<tc>, window_params = [{transform_indices = @transform_0, window_bounds = array<i64: 128, 128>}, {transform_indices = @transform_1, window_bounds = array<i64: 128, 128>}, {transform_indices = @transform_2, window_bounds = array<i64: 128, 128>}, {pipeline_mode = #tpu.pipeline_mode<synchronous>, transform_indices = @transform_3, window_bounds = array<i64: 128, 128>}, {pipeline_mode = #tpu.pipeline_mode<synchronous>, transform_indices = @transform_4, window_bounds = array<i64: 128, 128>}, {pipeline_mode = #tpu.pipeline_mode<synchronous>, transform_indices = @transform_5, window_bounds = array<i64: 1, 128>}, {pipeline_mode = #tpu.pipeline_mode<synchronous>, transform_indices = @transform_6, window_bounds = array<i64: 128, 128>}, {transform_indices = @transform_7, window_bounds = array<i64: 128, 128>}, {transform_indices = @transform_8, window_bounds = array<i64: 128, 128>}]} {
    %c0_i32 = arith.constant 0 : i32
    %0 = arith.cmpi eq, %arg1, %c0_i32 : i32
    %1 = arith.extui %0 : i1 to i32
    %c0_i32_0 = arith.constant 0 : i32
    %2 = arith.cmpi ne, %1, %c0_i32_0 : i32
    scf.if %2 {
      %cst_9 = arith.constant 0.000000e+00 : f32
      %12 = vector.broadcast %cst_9 : f32 to vector<128x128xf32>
      %c0_10 = arith.constant 0 : index
      %c0_11 = arith.constant 0 : index
      %13 = vector.load %arg11[%c0_10, %c0_11] : memref<128x128xf32, #tpu.memory_space<vmem>>, vector<128x128xf32>
      tpu.vector_store %arg11[%c0_10, %c0_11], %12 {strides = array<i32>} : memref<128x128xf32, #tpu.memory_space<vmem>>, vector<128x128xf32>,
    } else {
    }
    %c0 = arith.constant 0 : index
    %c0_1 = arith.constant 0 : index
    %3 = vector.load %arg11[%c0, %c0_1] : memref<128x128xf32, #tpu.memory_space<vmem>>, vector<128x128xf32>
    %c0_2 = arith.constant 0 : index
    %c0_3 = arith.constant 0 : index
    %4 = vector.load %arg2[%c0_2, %c0_3] : memref<128x128xbf16, #tpu.memory_space<vmem>>, vector<128x128xbf16>
    %c0_4 = arith.constant 0 : index
    %c0_5 = arith.constant 0 : index
    %5 = vector.load %arg3[%c0_4, %c0_5] : memref<128x128xbf16, #tpu.memory_space<vmem>>, vector<128x128xbf16>
    %cst = arith.constant dense<0.000000e+00> : vector<128x128xf32>
    %6 = tpu.matmul %4, %5, %cst {dimension_numbers = #tpu.dot_dimension_numbers<[1], [0], [0], [1], [0, 0, 1, 1], [], []>} : vector<128x128xbf16>, vector<128x128xbf16>, vector<128x128xf32> -> vector<128x128xf32>
    %7 = arith.addf %3, %6 : vector<128x128xf32>
    %c0_6 = arith.constant 0 : index
    %c0_7 = arith.constant 0 : index
    %8 = vector.load %arg11[%c0_6, %c0_7] : memref<128x128xf32, #tpu.memory_space<vmem>>, vector<128x128xf32>
    tpu.vector_store %arg11[%c0_6, %c0_7], %7 {strides = array<i32>} : memref<128x128xf32, #tpu.memory_space<vmem>>, vector<128x128xf32>,
    %c2_i32 = arith.constant 2 : i32
    %9 = arith.cmpi eq, %arg1, %c2_i32 : i32
    %10 = arith.extui %9 : i1 to i32
    %c0_i32_8 = arith.constant 0 : i32
    %11 = arith.cmpi ne, %10, %c0_i32_8 : i32
    scf.if %11 {
      %c0_9 = arith.constant 0 : index
      %c0_10 = arith.constant 0 : index
      %12 = vector.load %arg4[%c0_9, %c0_10] : memref<128x128xbf16, #tpu.memory_space<vmem>>, vector<128x128xbf16>
      %13 = arith.extf %12 : vector<128x128xbf16> to vector<128x128xf32>
      %c0_11 = arith.constant 0 : index
      %c0_12 = arith.constant 0 : index
      %14 = vector.load %arg5[%c0_11, %c0_12] : memref<128x128xf32, #tpu.memory_space<vmem>>, vector<128x128xf32>
      %cst_13 = arith.constant dense<0.000000e+00> : vector<128x128xf32>
      %15 = tpu.matmul %13, %14, %cst_13 {dimension_numbers = #tpu.dot_dimension_numbers<[1], [0], [0], [1], [0, 0, 1, 1], [], []>} : vector<128x128xf32>, vector<128x128xf32>, vector<128x128xf32> -> vector<128x128xf32>
      %c0_14 = arith.constant 0 : index
      %c0_15 = arith.constant 0 : index
      %16 = vector.load %arg11[%c0_14, %c0_15] : memref<128x128xf32, #tpu.memory_space<vmem>>, vector<128x128xf32>
      %c0_16 = arith.constant 0 : index
      %c0_17 = arith.constant 0 : index
      %17 = vector.load %arg6[%c0_16, %c0_17] : memref<128x128xf32, #tpu.memory_space<vmem>>, vector<128x128xf32>
      %cst_18 = arith.constant dense<0.000000e+00> : vector<128x128xf32>
      %18 = tpu.matmul %16, %17, %cst_18 {dimension_numbers = #tpu.dot_dimension_numbers<[1], [0], [0], [1], [0, 0, 1, 1], [], []>} : vector<128x128xf32>, vector<128x128xf32>, vector<128x128xf32> -> vector<128x128xf32>
      %cst_19 = arith.constant 1.6980058 : f32
      %19 = vector.broadcast %cst_19 : f32 to vector<128x128xf32>
      %20 = arith.mulf %19, %18 : vector<128x128xf32>
      %21 = arith.subf %15, %20 : vector<128x128xf32>
      %c0_20 = arith.constant 0 : index
      %c0_21 = arith.constant 0 : index
      %22 = vector.load %arg7[%c0_20, %c0_21] : memref<1x128xf32, #tpu.memory_space<vmem>>, vector<1x128xf32>
      %23 = vector.broadcast %22 : vector<1x128xf32> to vector<128x128xf32>
      %24 = arith.addf %21, %23 : vector<128x128xf32>
      %cst_22 = arith.constant 0.000000e+00 : f32
      %25 = vector.broadcast %cst_22 : f32 to vector<128x128xf32>
      %26 = arith.maximumf %24, %25 : vector<128x128xf32>
      %c0_23 = arith.constant 0 : index
      %c0_24 = arith.constant 0 : index
      %27 = vector.load %arg9[%c0_23, %c0_24] : memref<128x128xf32, #tpu.memory_space<vmem>>, vector<128x128xf32>
      tpu.vector_store %arg9[%c0_23, %c0_24], %26 {strides = array<i32>} : memref<128x128xf32, #tpu.memory_space<vmem>>, vector<128x128xf32>,
      %c0_25 = arith.constant 0 : index
      %c0_26 = arith.constant 0 : index
      %28 = vector.load %arg8[%c0_25, %c0_26] : memref<128x128xf32, #tpu.memory_space<vmem>>, vector<128x128xf32>
      %cst_27 = arith.constant dense<0.000000e+00> : vector<128x128xf32>
      %29 = tpu.matmul %26, %28, %cst_27 {dimension_numbers = #tpu.dot_dimension_numbers<[1], [0], [0], [1], [0, 0, 1, 1], [], []>} : vector<128x128xf32>, vector<128x128xf32>, vector<128x128xf32> -> vector<128x128xf32>
      %30 = arith.truncf %29 : vector<128x128xf32> to vector<128x128xbf16>
      %c0_28 = arith.constant 0 : index
      %c0_29 = arith.constant 0 : index
      %31 = vector.load %arg10[%c0_28, %c0_29] : memref<128x128xbf16, #tpu.memory_space<vmem>>, vector<128x128xbf16>
      tpu.vector_store %arg10[%c0_28, %c0_29], %30 {strides = array<i32>} : memref<128x128xbf16, #tpu.memory_space<vmem>>, vector<128x128xbf16>,
    } else {
    }
    return
  }
  func.func @transform_0(%arg0: i32, %arg1: i32) -> (i32, i32) {
    %c0_i32 = arith.constant 0 : i32
    return %arg0, %arg1 : i32, i32
  }
  func.func @transform_1(%arg0: i32, %arg1: i32) -> (i32, i32) {
    %c0_i32 = arith.constant 0 : i32
    %c0_i32_0 = arith.constant 0 : i32
    return %arg1, %c0_i32 : i32, i32
  }
  func.func @transform_2(%arg0: i32, %arg1: i32) -> (i32, i32) {
    %c0_i32 = arith.constant 0 : i32
    %c0_i32_0 = arith.constant 0 : i32
    return %arg0, %c0_i32 : i32, i32
  }
  func.func @transform_3(%arg0: i32, %arg1: i32) -> (i32, i32) {
    %c0_i32 = arith.constant 0 : i32
    %c0_i32_0 = arith.constant 0 : i32
    %c0_i32_1 = arith.constant 0 : i32
    return %c0_i32, %c0_i32_0 : i32, i32
  }
  func.func @transform_4(%arg0: i32, %arg1: i32) -> (i32, i32) {
    %c0_i32 = arith.constant 0 : i32
    %c0_i32_0 = arith.constant 0 : i32
    %c0_i32_1 = arith.constant 0 : i32
    return %c0_i32, %c0_i32_0 : i32, i32
  }
  func.func @transform_5(%arg0: i32, %arg1: i32) -> (i32, i32) {
    %c0_i32 = arith.constant 0 : i32
    %c0_i32_0 = arith.constant 0 : i32
    %c0_i32_1 = arith.constant 0 : i32
    return %c0_i32, %c0_i32_0 : i32, i32
  }
  func.func @transform_6(%arg0: i32, %arg1: i32) -> (i32, i32) {
    %c0_i32 = arith.constant 0 : i32
    %c0_i32_0 = arith.constant 0 : i32
    %c0_i32_1 = arith.constant 0 : i32
    return %c0_i32, %c0_i32_0 : i32, i32
  }
  func.func @transform_7(%arg0: i32, %arg1: i32) -> (i32, i32) {
    %c0_i32 = arith.constant 0 : i32
    %c0_i32_0 = arith.constant 0 : i32
    return %arg0, %c0_i32 : i32, i32
  }
  func.func @transform_8(%arg0: i32, %arg1: i32) -> (i32, i32) {
    %c0_i32 = arith.constant 0 : i32
    %c0_i32_0 = arith.constant 0 : i32
    return %arg0, %c0_i32 : i32, i32
  }
}

</mosaic_0001>

<bundles_post_ra>
// kernel: tpu_custom_call.1
= control target key start
LH: loop header
LB: loop body
LE: loop exit
PB: predicated region body
PF: predicated region fallthrough
CT: control target
= control target key end

     0   :  { %s3562_s0 = inlined_call_operand.hbm [shape: bf16[384,384], index: 0, kind: input, shape index: {}]   ;;  %s3563_s1 = inlined_call_operand.hbm [shape: bf16[384,128], index: 1, kind: input, shape index: {}]   ;;  %s3564_s2 = inlined_call_operand.hbm [shape: bf16[384,128], index: 2, kind: input, shape index: {}]   ;;  %s3565_s3 = inlined_call_operand.hbm [shape: f32[128,128], index: 3, kind: input, shape index: {}]   ;;  %s3566_s4 = inlined_call_operand.hbm [shape: f32[128,128], index: 4, kind: input, shape index: {}]   ;;  %s3567_s5 = inlined_call_operand.vmem [shape: f32[1,128], index: 5, kind: input, shape index: {}]   ;;  %s3568_s6 = inlined_call_operand.hbm [shape: f32[128,128], index: 6, kind: input, shape index: {}]   ;;  %s3569_s7 = inlined_call_operand.hbm [shape: f32[384,128], index: 7, kind: output, shape index: {0}]   ;;  %s3570_s8 = inlined_call_operand.hbm [shape: bf16[384,128], index: 8, kind: output, shape index: {1}]  }
   0x1   :  { %3601 = sst [smem:[#allocation34_spill]] %s3562_s0 }
   0x2   :  { %3602 = sst [smem:[#allocation35_spill]] %s3563_s1 }
   0x3   :  { %3603 = sst [smem:[#allocation36_spill]] %s3564_s2 }
   0x4   :  { %3604 = sst [smem:[#allocation37_spill]] %s3565_s3 }
   0x5   :  { %3605 = sst [smem:[#allocation38_spill]] %s3566_s4 }
   0x6   :  { %3606 = sst [smem:[#allocation39_spill]] %s3567_s5 }
   0x7   :  { %3607 = sst [smem:[#allocation40_spill]] %s3569_s7 }
   0x8   :  { %3608 = sst [smem:[#allocation41_spill]] %s3570_s8 }
   0x9   :  { %14 = vsyncpa [#allocation4], 0 }
   0xa   :  { %16 = vsyncpa [#allocation4 + $0x1], 0 }
   0xb   :  { %17 = vsyncpa [#allocation7], 0 }
   0xc   :  { %19 = vsyncpa [#allocation7 + $0x1], 0 }
   0xd   :  { %20 = vsyncpa [#allocation10], 0 }
   0xe   :  { %21 = vsyncpa [#allocation13], 0 }
   0xf   :  { %22 = vsyncpa [#allocation5], 0 }
  0x10   :  { %24 = vsyncpa [#allocation5 + $0x1], 0 }
  0x11   :  { %25 = vsyncpa [#allocation16], 0 }
  0x12   :  { %27 = vsyncpa [#allocation16 + $0x1], 0  ;;  %s2945_s27 = smov 0   ;;  %s2947_s28 = smov 0  }
  0x13   :  { %s2949_s29 = smov 0   ;;  %s2951_s30 = smov 0  }
  0x14   :  { %s2953_s9 = smov 0   ;;  %s2955_s10 = smov 0  }
  0x15   :  { %s2957_s11 = smov 0   ;;  %s2959_s12 = smov 0  }
  0x16   :  { %s2961_s13 = smov 0   ;;  %s2963_s14 = smov 0  }
  0x17   :  { %s2965_s15 = smov 0   ;;  %s2967_s16 = smov 0  }
  0x18   :  { %s2969_s17 = smov 0   ;;  %s2971_s18 = smov 0  }
  0x19 LB: > { %3609 = sst [smem:[#allocation24_spill]] %s2844_s9  ;;  %s3016_s19 = sadd.s32 4294967295, %s2880_s18   ;;  %s2880_s18 = sphi %s2971_s18, %s33_s18   ;;  %s2876_s17 = sphi %s2969_s17, %s3687_s17   ;;  %s2872_s16 = sphi %s2967_s16, %s3686_s16   ;;  %s2868_s15 = sphi %s2965_s15, %s3685_s15   ;;  %s2864_s14 = sphi %s2963_s14, %s3684_s14   ;;  %s2860_s13 = sphi %s2961_s13, %s3683_s13   ;;  %s2856_s12 = sphi %s2959_s12, %s3682_s12   ;;  %s2852_s11 = sphi %s2957_s11, %s3681_s11   ;;  %s2848_s10 = sphi %s2955_s10, %s3675_s10   ;;  %s2844_s9 = sphi %s2953_s9, %s3674_s9   ;;  %s2840_s30 = sphi %s2951_s30, %s3673_s30   ;;  %s2836_s29 = sphi %s2949_s29, %s3680_s29   ;;  %s2832_s28 = sphi %s2947_s28, %s3679_s28   ;;  %s2828_s27 = sphi %s2945_s27, %s3678_s27  }
  0x1a   : > { %3610 = sst [smem:[#allocation25_spill]] %s2848_s10  ;;  %p1700_p0 = scmp.ge.s32.totalorder %s2880_s18, 1 }
  0x1b   : > { %3611 = sst [smem:[#allocation26_spill]] %s2864_s14  ;;  %p3574_p1 = scmp.eq.s32.totalorder %s3016_s19, 0 }
  0x1c   : > { %3612 = sst [smem:[#allocation27_spill]] %s2868_s15  ;;  %p266_p3 = scmp.lt.s32.totalorder %s2880_s18, 10 }
  0x1d   : > { %s2882_s21 = smov [#allocation9]   ;;  %s3616_s3 = sld [smem:[#allocation37_spill]] }
  0x1e   : > { %p3022_p4 = pnand %p1700_p0, %p266_p3  ;;  %s278_s22 = sshll.u32 %s2882_s21, 4  ;;  %s279_s22 = int_to_ptr.vmem [resolvable:$true] %s278_s22 }
  0x20   : > { %s3613_s20 = scalar_select %p3022_p4, 1, 0 }
  0x21   : > { %p2336_p5 = pneg %p3022_p4 }
  0x22   : > { %3614 = sst [smem:[#allocation28_spill]] %s3613_s20 }
  0x23   : > { %p3030_p6 = pnand %p2336_p5, %p3574_p1  ;;  %s2512_s26 = scalar_lea.hbm %s3616_s3, 2048 }
  0x24   : > { %p2513_p7 = scmp.ne.s32.totalorder %s3616_s3, %s2512_s26  ;;  %p2519_p11 = scmp.lt.u32.totalorder %s2512_s26, %s3616_s3 }
  0x25   : > { %s3615_s23 = scalar_select %p3030_p6, 1, 0 }
  0x26   : > { %p3042_p8 = pneg %p3030_p6 }
  0x28   : > { %p2515_p9 = pnand %p3042_p8, %p2513_p7 }
  0x2a   : > { %p2516_p10 = pneg %p2515_p9 }
  0x2c   : > { %p2521_p12 = pnand %p2519_p11, %p2516_p10 }
  0x2e   : > { %2524 = shalt.err (!%p2521_p12)
}
  0x2f   : > { %s2525_s24 = scalar_lea.vmem %s279_s22, 2048  ;;  %p2533_p5 = scmp.lt.s32.totalorder %s279_s22, %s279_s22 }
  0x30   : > { %p2526_p13 = scmp.ne.s32.totalorder %s279_s22, %s2525_s24  ;;  %p2534_p2 = scmp.lt.s32.totalorder %s2525_s24, %s2525_s24 }
  0x32   : > { %p2528_p0 = pnand %p2526_p13, %p3042_p8  ;;  %p2535_p1 = por %p2534_p2, %p2533_p5 }
  0x34   : > { %p2529_p3 = pneg %p2528_p0 }
  0x36   : > { %p2536_p4 = pnand %p2535_p1, %p2529_p3 }
  0x38   : > { %2539 = shalt.err (!%p2536_p4)
}
  0x39   : > { %s3576_s7 = smov 128   ;;  %s3578_s5 = smov 8  }
  0x3a   : > { %2339 = dma.hbm_to_vmem [thread:$0]  (!%p3030_p6), %s3616_s3, 2048, %s279_s22, [#allocation10], %s3576_s7, %s3576_s7, %s3578_s5  }
  0x3b   : > { %s42_s25 = sadd.s32 1, %s2872_s16  ;;  %s45_s26 = sadd.s32 1, %s2876_s17 }
  0x3c   : > { %p43_p1 = scmp.ge.s32.totalorder %s42_s25, 3  ;;  %p3589_p2 = scmp.eq.s32.totalorder %s2880_s18, 0 }
  0x3d   : > { %s80_s24 = sadd.s32 1, %s2848_s10  ;;  %p87_p4 = scmp.ne.s32.totalorder %s2848_s10, %s2844_s9 }
  0x3e   : > { %s3689_s25 = smov (%p43_p1, %s42_s25), 0  ;;  %s3691_s26 = smov (!%p43_p1, %s45_s26), %s2876_s17 }
  0x3f   : > { %3618 = sst [smem:[#allocation29_spill]] %s3689_s25  ;;  %s50_s14 = ssub.s32 %s2872_s16, %s3689_s25 }
  0x40   : > { %p3074_p7 = por %p87_p4, %p3589_p2  ;;  %p47_p9 = scmp.ge.s32.totalorder %s3691_s26, 3 }
  0x41   : > { %p78_p10 = scmp.eq.s32.totalorder %s50_s14, 0  ;;  %p93_p11 = scmp.ne.s32.totalorder %s2844_s9, %s2840_s30 }
  0x42   : > { %p3588_p12 = scmp.lt.s32.totalorder %s2880_s18, 9  ;;  %s3693_s26 = smov (%p47_p9, %s3691_s26), 0 }
  0x43   : > { %3620 = sst [smem:[#allocation30_spill]] %s3693_s26  ;;  %s3088_s15 = ssub.s32 %s2876_s17, %s3693_s26 }
  0x44   : > { %s3084_s8 = scalar_select %p78_p10, %s2848_s10, %s80_s24  }
  0x45   : > { %p3622_p13 = scmp.eq.s32.totalorder %s3016_s19, 0  ;;  %s51_s5 = sor.u32 %s50_s14, %s3088_s15 }
  0x46   : > { %3621 = sst [smem:[#allocation31_spill]] %s3084_s8  ;;  %p3098_p5 = scmp.eq.s32.totalorder %s51_s5, 0 }
  0x47   : > { %p3092_p0 = por %p93_p11, %p3622_p13  ;;  %s344_s3 = sand.u32 1, %s2880_s18  }
  0x48   : > { %s3625_s30 = scalar_select %p3098_p5, 1, 0 }
  0x49   : > { %s3623_s7 = scalar_select %p3092_p0, 1, 0 }
  0x4a   : > { %s346_s25 = sand.u32 1, %s2848_s10   ;;  %s1767_s24 = sshll.u32 %s2872_s16, 10 }
  0x4b   : > { %3624 = sst [smem:[#allocation32_spill]] %s3623_s7  ;;  %s1709_s9 = sshll.u32 %s346_s25, 6 }
  0x4c   : > { %s3626_s1 = sld [smem:[#allocation35_spill]]  ;;  %s348_s2 = scalar_lea.vmem [#allocation6], %s1709_s9 }
  0x4d   : > { %s355_s14 = sshll.u32 %s348_s2, 4  ;;  %p3114_p1 = pnand %p3588_p12, %p3074_p7  ;;  %s3118_s14 = int_to_ptr.vmem [resolvable:$true] %s355_s14 }
  0x4e   : > { %s2885_s25 = smov [#allocation11]   ;;  %s3122_s8 = scalar_lea.sflag [#allocation7], %s344_s3 }
  0x4f   : > { %s3120_s26 = sshll.u32 %s2885_s25, 4  ;;  %3628 = sst [smem:[#allocation33_spill]] %s3122_s8  ;;  %s292_s26 = int_to_ptr.vmem [resolvable:$true] %s3120_s26 }
  0x50   : > { %p2542_p9 = pneg %p3114_p1 }
  0x52   : > { %s3108_s20 = scalar_lea.hbm %s3626_s1, %s1767_s24  ;;  %s2545_s22 = scalar_lea.hbm %s3626_s1, 3072 }
  0x53   : > { %s2540_s24 = scalar_lea.hbm %s3108_s20, 1024  ;;  %p2546_p11 = scmp.lt.u32.totalorder %s3108_s20, %s3626_s1 }
  0x54   : > { %p2541_p4 = scmp.ne.s32.totalorder %s3108_s20, %s2540_s24  ;;  %p2547_p13 = scmp.lt.u32.totalorder %s2545_s22, %s2540_s24 }
  0x55   : > { %p2549_p12 = scmp.lt.u32.totalorder %s2540_s24, %s3108_s20 }
  0x56   : > { %p2543_p10 = pnand %p2542_p9, %p2541_p4  ;;  %p2548_p3 = por %p2547_p13, %p2546_p11 }
  0x58   : > { %p2544_p7 = pneg %p2543_p10  ;;  %p2550_p2 = por %p2549_p12, %p2548_p3 }
  0x5a   : > { %p2551_p0 = pnand %p2550_p2, %p2544_p7 }
  0x5c   : > { %2554 = shalt.err (!%p2551_p0)
}
  0x5d   : > { %s2555_s3 = scalar_lea.vmem %s3118_s14, 1024  ;;  %s2886_s25 = smov [#allocation6]  }
  0x5e   : > { %p2556_p4 = scmp.ne.s32.totalorder %s3118_s14, %s2555_s3  ;;  %s2560_s2 = sshll.u32 %s2886_s25, 4  ;;  %s2561_s2 = int_to_ptr.vmem [resolvable:$false] %s2560_s2 }
  0x5f   : > { %s2562_s10 = scalar_lea.vmem %s2561_s2, 2048  ;;  %p2563_p6 = scmp.lt.s32.totalorder %s3118_s14, %s2561_s2 }
  0x60   : > { %p2558_p10 = pnand %p2556_p4, %p2542_p9  ;;  %p2564_p11 = scmp.lt.s32.totalorder %s2562_s10, %s2555_s3 }
  0x62   : > { %p2559_p5 = pneg %p2558_p10  ;;  %p2565_p13 = por %p2564_p11, %p2563_p6 }
  0x64   : > { %p2566_p12 = pnand %p2565_p13, %p2559_p5 }
  0x66   : > { %2569 = shalt.err (!%p2566_p12)
}
  0x67   : > { %s3593_s7 = smov 64   ;;  %s3595_s24 = smov 4  }
  0x68   : > { %2352 = dma.hbm_to_vmem [thread:$0]  (!%p3114_p1), %s3108_s20, 1024, %s3118_s14, %s3122_s8, %s3593_s7, %s3593_s7, %s3595_s24  }
  0x69   : > { %s3629_s4 = sld [smem:[#allocation38_spill]] }
  0x6f   : > { %s2570_s3 = scalar_lea.hbm %s3629_s4, 2048 }
  0x70   : > { %p2571_p6 = scmp.ne.s32.totalorder %s3629_s4, %s2570_s3  ;;  %p2577_p3 = scmp.lt.u32.totalorder %s2570_s3, %s3629_s4 }
  0x72   : > { %p2573_p2 = pnand %p2571_p6, %p3042_p8 }
  0x74   : > { %p2574_p0 = pneg %p2573_p2 }
  0x76   : > { %p2579_p5 = pnand %p2577_p3, %p2574_p0 }
  0x78   : > { %2582 = shalt.err (!%p2579_p5)
}
  0x79   : > { %s2583_s5 = scalar_lea.vmem %s292_s26, 2048  ;;  %p2591_p4 = scmp.lt.s32.totalorder %s292_s26, %s292_s26 }
  0x7a   : > { %p2584_p1 = scmp.ne.s32.totalorder %s292_s26, %s2583_s5  ;;  %p2592_p10 = scmp.lt.s32.totalorder %s2583_s5, %s2583_s5 }
  0x7c   : > { %p2586_p9 = pnand %p2584_p1, %p3042_p8  ;;  %p2593_p11 = por %p2592_p10, %p2591_p4 }
  0x7e   : > { %p2587_p7 = pneg %p2586_p9 }
  0x80   : > { %p2594_p13 = pnand %p2593_p11, %p2587_p7 }
  0x82   : > { %2597 = shalt.err (!%p2594_p13)
}
  0x83   : > { %p3630_p12 = scmp.ne.s32.totalorder %s3615_s23, 0  ;;  %s3631_s20 = smov 8  }
  0x84   : > { %s3632_s14 = smov 128   ;;  %s2889_s22 = smov [#allocation12]  }
  0x85   : > { %2342 = dma.hbm_to_vmem [thread:$0]  (!%p3630_p12), %s3629_s4, 2048, %s292_s26, [#allocation10], %s3632_s14, %s3632_s14, %s3631_s20  }
  0x86   : > { %s307_s3 = sshll.u32 %s2889_s22, 4  ;;  %s2598_s10 = scalar_lea.hbm %s3568_s6, 2048  ;;  %s308_s3 = int_to_ptr.vmem [resolvable:$true] %s307_s3 }
  0x87   : > { %p2599_p6 = scmp.ne.s32.totalorder %s3568_s6, %s2598_s10  ;;  %p2605_p3 = scmp.lt.u32.totalorder %s2598_s10, %s3568_s6 }
  0x89   : > { %p2601_p2 = pnand %p2599_p6, %p3042_p8 }
  0x8b   : > { %p2602_p0 = pneg %p2601_p2 }
  0x8d   : > { %p2607_p5 = pnand %p2605_p3, %p2602_p0 }
  0x8f   : > { %2610 = shalt.err (!%p2607_p5)
}
  0x90   : > { %s2611_s26 = scalar_lea.vmem %s308_s3, 2048  ;;  %p2619_p4 = scmp.lt.s32.totalorder %s308_s3, %s308_s3 }
  0x91   : > { %p2612_p1 = scmp.ne.s32.totalorder %s308_s3, %s2611_s26  ;;  %p2620_p10 = scmp.lt.s32.totalorder %s2611_s26, %s2611_s26 }
  0x93   : > { %p2614_p9 = pnand %p2612_p1, %p3042_p8  ;;  %p2621_p11 = por %p2620_p10, %p2619_p4 }
  0x95   : > { %p2615_p7 = pneg %p2614_p9 }
  0x97   : > { %p2622_p13 = pnand %p2621_p11, %p2615_p7 }
  0x99   : > { %2625 = shalt.err (!%p2622_p13)
}
  0x9a   : > { %2345 = dma.hbm_to_vmem [thread:$0]  (!%p3630_p12), %s3568_s6, 2048, %s308_s3, [#allocation13], %s3632_s14, %s3632_s14, %s3631_s20  }
  0x9b   : > { %s54_s23 = sadd.s32 1, %s2860_s13  ;;  %p61_p8 = scmp.ne.s32.totalorder %s2860_s13, %s2856_s12 }
  0x9c   : > { %p3633_p6 = scmp.ne.s32.totalorder %s3625_s30, 0  ;;  %p3634_p2 = scmp.eq.s32.totalorder %s2880_s18, 0 }
  0x9d   : > { %p67_p3 = scmp.ne.s32.totalorder %s2856_s12, %s2852_s11  ;;  %s321_s24 = sand.u32 1, %s2860_s13  }
  0x9e   : > { %s3202_s21 = scalar_select %p3633_p6, %s2860_s13, %s54_s23  }
  0x9f   : > { %p63_p0 = por %p3634_p2, %p61_p8  ;;  %s2313_s1 = smul.u32 48, %s2876_s17 }
  0xa0   : > { %p3635_p5 = scmp.eq.s32.totalorder %s3016_s19, 0  ;;  %s1705_s22 = sshll.u32 %s321_s24, 6 }
  0xa1   : > { %s331_s25 = sadd.s32 %s2872_s16, %s2313_s1  ;;  %s3637_s0 = sld [smem:[#allocation34_spill]] }
  0xa2   : > { %p3212_p1 = por %p3635_p5, %p67_p3  ;;  %s1708_s2 = sshll.u32 %s331_s25, 6 }
  0xa3   : > { %s325_s11 = scalar_lea.vmem [#allocation3], %s1705_s22  ;;  %p3638_p12 = scmp.lt.s32.totalorder %s2880_s18, 9 }
  0xa4   : > { %s334_s30 = sshll.u32 %s325_s11, 4  ;;  %s3230_s5 = scalar_lea.sflag [#allocation4], %s321_s24  ;;  %s3222_s30 = int_to_ptr.vmem [resolvable:$true] %s334_s30 }
  0xa5   : > { %p3226_p9 = pnand %p3638_p12, %p63_p0 }
  0xa7   : > { %s3220_s3 = scalar_lea.hbm %s3637_s0, %s1708_s2  ;;  %p2628_p4 = pneg %p3226_p9 }
  0xa8   : > { %s2626_s26 = scalar_lea.hbm %s3220_s3, 1024  ;;  %s2631_s23 = scalar_lea.hbm %s3637_s0, 9216 }
  0xa9   : > { %p2627_p7 = scmp.ne.s32.totalorder %s3220_s3, %s2626_s26  ;;  %p2632_p13 = scmp.lt.u32.totalorder %s3220_s3, %s3637_s0 }
  0xaa   : > { %p2633_p8 = scmp.lt.u32.totalorder %s2631_s23, %s2626_s26  ;;  %p2635_p2 = scmp.lt.u32.totalorder %s2626_s26, %s3220_s3 }
  0xab   : > { %p2629_p10 = pnand %p2628_p4, %p2627_p7 }
  0xac   : > { %p2634_p6 = por %p2633_p8, %p2632_p13 }
  0xad   : > { %p2630_p11 = pneg %p2629_p10 }
  0xae   : > { %p2636_p0 = por %p2635_p2, %p2634_p6 }
  0xb0   : > { %p2637_p3 = pnand %p2636_p0, %p2630_p11 }
  0xb2   : > { %2640 = shalt.err (!%p2637_p3)
}
  0xb3   : > { %s2641_s24 = scalar_lea.vmem %s3222_s30, 1024  ;;  %s2890_s25 = smov [#allocation3]  }
  0xb4   : > { %p2642_p5 = scmp.ne.s32.totalorder %s3222_s30, %s2641_s24  ;;  %s2646_s2 = sshll.u32 %s2890_s25, 4  ;;  %s2647_s2 = int_to_ptr.vmem [resolvable:$false] %s2646_s2 }
  0xb5   : > { %s2648_s20 = scalar_lea.vmem %s2647_s2, 2048  ;;  %p2649_p10 = scmp.lt.s32.totalorder %s3222_s30, %s2647_s2 }
  0xb6   : > { %p2644_p12 = pnand %p2642_p5, %p2628_p4  ;;  %p2650_p13 = scmp.lt.s32.totalorder %s2648_s20, %s2641_s24 }
  0xb8   : > { %p2645_p7 = pneg %p2644_p12  ;;  %p2651_p8 = por %p2650_p13, %p2649_p10 }
  0xba   : > { %p2652_p6 = pnand %p2651_p8, %p2645_p7 }
  0xbc   : > { %2655 = shalt.err (!%p2652_p6)
}
  0xbd   : > { %s2891_s14 = smov 192   ;;  %s3640_s11 = smov 4  }
  0xbe   : > { %s3641_s26 = smov 64   ;;  %s1699_s10 = sadd.s32 4294967294, %s2880_s18  }
  0xbf   : > { %2349 = dma.hbm_to_vmem [thread:$0]  (!%p3226_p9), %s3220_s3, 1024, %s3222_s30, %s3230_s5, %s2891_s14, %s3641_s26, %s3640_s11  }
  0xc0   : > { %s106_s8 = sadd.s32 1, %s2836_s29  ;;  %p3642_p4 = scmp.eq.s32.totalorder %s3088_s15, 0 }
  0xc1   : > { %p113_p11 = scmp.ne.s32.totalorder %s2836_s29, %s2832_s28  ;;  %p119_p2 = scmp.ne.s32.totalorder %s2832_s28, %s2828_s27 }
  0xc2   : > { %s3265_s7 = scalar_select %p3642_p4, %s2836_s29, %s106_s8  }
  0xc3   : > { %p233_p0 = scmp.eq.s32.totalorder %s1699_s10, 8  ;;  %s367_s23 = sand.u32 1, %s2836_s29  }
  0xc4   : > { %p3643_p3 = scmp.eq.s32.totalorder %s2880_s18, 0  ;;  %p3644_p12 = scmp.eq.s32.totalorder %s3016_s19, 0 }
  0xc5   : > { %p3646_p10 = scmp.eq.s32.totalorder %s3016_s19, 8  ;;  %p3286_p9 = por %p233_p0, %p119_p2 }
  0xc6   : > { %p115_p5 = por %p113_p11, %p3643_p3  ;;  %p3276_p7 = por %p119_p2, %p3644_p12 }
  0xc7   : > { %p3282_p13 = por %p3646_p10, %p113_p11  ;;  %s1712_s30 = sshll.u32 %s367_s23, 6 }
  0xc8   : > { %s3645_s1 = scalar_select %p3276_p7, 1, 0 }
  0xc9   : > { %s3647_s3 = scalar_select %p3282_p13, 1, 0 }
  0xca   : > { %s3648_s15 = scalar_select %p3286_p9, 1, 0 }
  0xcb   : > { %s1768_s5 = sshll.u32 %s2876_s17, 10  ;;  %s3649_s25 = sld [smem:[#allocation36_spill]] }
  0xcc   : > { %s369_s20 = scalar_lea.vmem [#allocation8], %s1712_s30  ;;  %p3650_p8 = scmp.lt.s32.totalorder %s2880_s18, 9 }
  0xcd   : > { %s376_s14 = sshll.u32 %s369_s20, 4  ;;  %s3302_s14 = int_to_ptr.vmem [resolvable:$true] %s376_s14 }
  0xce   : > { %p3298_p6 = pnand %p3650_p8, %p115_p5 }
  0xd0   : > { %p2658_p11 = pneg %p3298_p6 }
  0xd1   : > { %s3294_s2 = scalar_lea.hbm %s3649_s25, %s1768_s5  ;;  %s2661_s5 = scalar_lea.hbm %s3649_s25, 3072 }
  0xd2   : > { %s2656_s8 = scalar_lea.hbm %s3294_s2, 1024  ;;  %p2662_p3 = scmp.lt.u32.totalorder %s3294_s2, %s3649_s25 }
  0xd3   : > { %p2657_p4 = scmp.ne.s32.totalorder %s3294_s2, %s2656_s8  ;;  %p2663_p5 = scmp.lt.u32.totalorder %s2661_s5, %s2656_s8 }
  0xd4   : > { %p2665_p10 = scmp.lt.u32.totalorder %s2656_s8, %s3294_s2 }
  0xd5   : > { %p2659_p2 = pnand %p2658_p11, %p2657_p4  ;;  %p2664_p12 = por %p2663_p5, %p2662_p3 }
  0xd7   : > { %p2660_p0 = pneg %p2659_p2  ;;  %p2666_p8 = por %p2665_p10, %p2664_p12 }
  0xd9   : > { %p2667_p9 = pnand %p2666_p8, %p2660_p0 }
  0xdb   : > { %2670 = shalt.err (!%p2667_p9)
}
  0xdc   : > { %s2671_s20 = scalar_lea.vmem %s3302_s14, 1024  ;;  %s2892_s23 = smov [#allocation8]  }
  0xdd   : > { %p2672_p4 = scmp.ne.s32.totalorder %s3302_s14, %s2671_s20  ;;  %s2676_s30 = sshll.u32 %s2892_s23, 4  ;;  %s2677_s30 = int_to_ptr.vmem [resolvable:$false] %s2676_s30 }
  0xde   : > { %s2678_s22 = scalar_lea.vmem %s2677_s30, 2048  ;;  %p2679_p7 = scmp.lt.s32.totalorder %s3302_s14, %s2677_s30 }
  0xdf   : > { %p2674_p2 = pnand %p2672_p4, %p2658_p11  ;;  %p2680_p3 = scmp.lt.s32.totalorder %s2678_s22, %s2671_s20 }
  0xe1   : > { %p2675_p13 = pneg %p2674_p2  ;;  %p2681_p5 = por %p2680_p3, %p2679_p7 }
  0xe3   : > { %p2682_p12 = pnand %p2681_p5, %p2675_p13 }
  0xe5   : > { %2685 = shalt.err (!%p2682_p12)
}
  0xe6   : > { %s3652_s8 = sld [smem:[#allocation33_spill]]  ;;  %s3653_s5 = sld [smem:[#allocation28_spill]] }
  0xec   : > { %2355 = dma.hbm_to_vmem [thread:$0]  (!%p3298_p6), %s3294_s2, 1024, %s3302_s14, %s3652_s8, %s3641_s26, %s3641_s26, %s3640_s11  }
  0xed   : > { %p3654_p9 = scmp.ne.s32.totalorder %s3653_s5, 0 }
  0xee   : > { %s390_s24 = sand.u32 (!%p3654_p9), 1, %s2856_s12  }
  0xef   : > { %388 = sbr.rel (%p3654_p9) target bundleno = 1077 (0x435), region = 48  ;;  %s1716_s23 = sshll.u32 (!%p3654_p9), %s390_s24, 6 }
  0xf0   : > { %s391_s20 = scalar_lea.sflag (!%p3654_p9), [#allocation4], %s390_s24  ;;  %s3336_s30 = scalar_lea.vmem (!%p3654_p9), [#allocation3], %s1716_s23 }
  0xf6   : > { %2799 = dma.done.wait (%p3212_p1), %s391_s20, 1024  }
  0xf7   : > { %2801 = vsyncadd (%p3212_p1), %s391_s20, 4294966272  ;;  %s3655_s10 = sld [smem:[#allocation24_spill]]  ;;  %s399_s0 = sand.u32 1, %s3016_s19  }
  0xf8   : > { %s3656_s22 = sld [smem:[#allocation32_spill]]  ;;  %s400_s2 = scalar_lea.sflag [#allocation7], %s399_s0 }
  0xfd   : > { %s401_s11 = sand.u32 1, %s3655_s10  }
  0xfe   : > { %s1717_s26 = sshll.u32 %s401_s11, 6  ;;  %p3657_p7 = scmp.ne.s32.totalorder %s3656_s22, 0 }
  0xff   : > { %s3344_s14 = scalar_lea.vmem [#allocation6], %s1717_s26 }
 0x100   : > { %2803 = dma.done.wait (%p3657_p7), %s400_s2, 1024  }
 0x101   : > { %2805 = vsyncadd (%p3657_p7), %s400_s2, 4294966272  ;;  %s3351_s8 = sand.u32 1, %s2832_s28   ;;  %p3658_p1 = scmp.ne.s32.totalorder %s3645_s1, 0 }
 0x102   : > { %s1718_s9 = sshll.u32 %s3351_s8, 6 }
 0x103   : > { %s3354_s5 = scalar_lea.vmem [#allocation8], %s1718_s9 }
 0x104   : > { %2807 = dma.done.wait (%p3658_p1), %s400_s2, 1024  }
 0x105   : > { %2809 = vsyncadd (%p3658_p1), %s400_s2, 4294966272  ;;  %p3659_p13 = scmp.eq.s32.totalorder %s3016_s19, 0 }
 0x107   : > { %2811 = dma.done.wait (%p3659_p13), [#allocation10], 4096   ;;  %p3660_p6 = pmov %p3659_p13 }
 0x109   : > { %2813 = vsyncadd (%p3660_p6), [#allocation10], 4294963200  ;;  %p3661_p11 = pmov %p3660_p6 }
 0x10a   : > { %p3662_p0 = pmov %p3660_p6 }
 0x10b   : > { %2815 = dma.done.wait (%p3661_p11), [#allocation13], 2048  }
 0x10c   : > { %2817 = vsyncadd (%p3662_p0), [#allocation13], 4294965248  ;;  %s1722_s0 = sshll.u32 %s3351_s8, 7  ;;  %s3371_s23 = scalar_lea.vmem [#allocation15], %s1718_s9 }
 0x10d   : > { %s3369_s24 = scalar_lea.vmem [#allocation14], %s1722_s0  ;;  %s3663_s1 = sld [smem:[#allocation26_spill]] }
 0x113   : > { %p1724_p10 = scmp.ne.s32.totalorder %s3663_s1, 0 }
 0x114   : > { %v2893_v0 = vmov (!%p1724_p10), 0.0  }
 0x115   : > { %481 = sbr.rel (%p1724_p10) target bundleno = 285 (0x11d), region = 76  ;;  %482 = vst [vmem:[#allocation2] sm:$0xff] (!%p1724_p10), %v2893_v0  ;;  %483 = vst [vmem:[#allocation2 + $0x8] sm:$0xff] (!%p1724_p10), %v2893_v0 }
 0x116   : > { %484 = vst [vmem:[#allocation2 + $0x10] sm:$0xff] (!%p1724_p10), %v2893_v0  ;;  %485 = vst [vmem:[#allocation2 + $0x18] sm:$0xff] (!%p1724_p10), %v2893_v0 }
 0x117   : > { %486 = vst [vmem:[#allocation2 + $0x20] sm:$0xff] (!%p1724_p10), %v2893_v0  ;;  %487 = vst [vmem:[#allocation2 + $0x28] sm:$0xff] (!%p1724_p10), %v2893_v0 }
 0x118   : > { %488 = vst [vmem:[#allocation2 + $0x30] sm:$0xff] (!%p1724_p10), %v2893_v0  ;;  %489 = vst [vmem:[#allocation2 + $0x38] sm:$0xff] (!%p1724_p10), %v2893_v0 }
 0x119   : > { %490 = vst [vmem:[#allocation2 + $0x40] sm:$0xff] (!%p1724_p10), %v2893_v0  ;;  %491 = vst [vmem:[#allocation2 + $0x48] sm:$0xff] (!%p1724_p10), %v2893_v0 }
 0x11a   : > { %492 = vst [vmem:[#allocation2 + $0x50] sm:$0xff] (!%p1724_p10), %v2893_v0  ;;  %493 = vst [vmem:[#allocation2 + $0x58] sm:$0xff] (!%p1724_p10), %v2893_v0 }
 0x11b   : > { %494 = vst [vmem:[#allocation2 + $0x60] sm:$0xff] (!%p1724_p10), %v2893_v0  ;;  %495 = vst [vmem:[#allocation2 + $0x68] sm:$0xff] (!%p1724_p10), %v2893_v0 }
 0x11c   : > { %496 = vst [vmem:[#allocation2 + $0x70] sm:$0xff] %v2893_v0  ;;  %497 = vst [vmem:[#allocation2 + $0x78] sm:$0xff] %v2893_v0 }
 0x11d PF: > { %v2496_v1 = vld [vmem:[%s3344_s14] sm:$0xff]   ;;  %v2497_v2 = vld [vmem:[%s3344_s14 + $0x8] sm:$0xff]   ;;  %v2498_v3 = vld [vmem:[%s3344_s14 + $0x10] sm:$0xff]   ;;  %s3664_s19 = sld [smem:[#allocation26_spill]] }
 0x11e   : > { %1985 = vmatprep.subr.bf16.mxu0 %v2496_v1  ;;  %2281 = vmatprep.subr.bf16.mxu1 %v2496_v1  ;;  %v2499_v4 = vld [vmem:[%s3344_s14 + $0x18] sm:$0xff]   ;;  %v2504_v5 = vld [vmem:[%s3336_s30] sm:$0xff]   ;;  %v2501_v8 = vld [vmem:[%s3344_s14 + $0x28] sm:$0xff]  }
 0x11f   : > { %1986 = vmatpush3.bf16.msra.mxu0 %v2496_v1  ;;  %2289 = vmatpush3.bf16.msra.mxu1 %v2496_v1  ;;  %v2505_v6 = vld [vmem:[%s3336_s30 + $0x20] sm:$0xff]   ;;  %v2502_v9 = vld [vmem:[%s3344_s14 + $0x30] sm:$0xff]   ;;  %v2503_v10 = vld [vmem:[%s3344_s14 + $0x38] sm:$0xff]  }
 0x120   : > { %1987 = vmatprep.subr.bf16.mxu0 %v2497_v2  ;;  %2282 = vmatprep.subr.bf16.mxu1 %v2497_v2  ;;  %v2500_v7 = vld [vmem:[%s3344_s14 + $0x20] sm:$0xff]   ;;  %v2506_v11 = vld [vmem:[%s3336_s30 + $0x8] sm:$0xff]   ;;  %v2508_v13 = vld [vmem:[%s3336_s30 + $0x10] sm:$0xff]  }
 0x121   : > { %2001 = vmatprep.mubr.bf16.mxu0 %v2504_v5  ;;  %2009 = vmatprep.mubr.bf16.mxu1 %v2505_v6  ;;  %v2507_v12 = vld [vmem:[%s3336_s30 + $0x28] sm:$0xff]   ;;  %v2509_v14 = vld [vmem:[%s3336_s30 + $0x30] sm:$0xff]   ;;  %v2510_v15 = vld [vmem:[%s3336_s30 + $0x18] sm:$0xff]  }
 0x122   : > { %v2511_v16 = vld [vmem:[%s3336_s30 + $0x38] sm:$0xff]   ;;  %v500_v17 = vld [vmem:[#allocation2 + $0x10] sm:$0xff]  ;;  %v498_v19 = vld [vmem:[#allocation2] sm:$0xff] }
 0x123   : > { %1988 = vmatpush3.bf16.msra.mxu0 %v2497_v2  ;;  %2290 = vmatpush3.bf16.msra.mxu1 %v2497_v2  ;;  %v508_v18 = vld [vmem:[#allocation2 + $0x50] sm:$0xff]  ;;  %v506_v20 = vld [vmem:[#allocation2 + $0x40] sm:$0xff]  ;;  %v501_v23 = vld [vmem:[#allocation2 + $0x18] sm:$0xff]  ;;  %p1741_p8 = scmp.ne.s32.totalorder %s3664_s19, 2 }
 0x124   : > { %1989 = vmatprep.subr.bf16.mxu0 %v2498_v3  ;;  %2283 = vmatprep.subr.bf16.mxu1 %v2498_v3  ;;  %v509_v24 = vld [vmem:[#allocation2 + $0x58] sm:$0xff]  ;;  %v499_v29 = vld [vmem:[#allocation2 + $0x8] sm:$0xff]  ;;  %v504_v41 = vld [vmem:[#allocation2 + $0x30] sm:$0xff]  ;;  %s3665_s10 = sld [smem:[#allocation39_spill]] (!%p1741_p8) }
 0x125   : > { %v507_v30 = vld [vmem:[#allocation2 + $0x48] sm:$0xff]  ;;  %v512_v42 = vld [vmem:[#allocation2 + $0x70] sm:$0xff]  ;;  %v502_v43 = vld [vmem:[#allocation2 + $0x20] sm:$0xff] }
 0x126   : > { %v510_v44 = vld [vmem:[#allocation2 + $0x60] sm:$0xff]  ;;  %v505_v47 = vld [vmem:[#allocation2 + $0x38] sm:$0xff]  ;;  %v503_v53 = vld [vmem:[#allocation2 + $0x28] sm:$0xff] }
 0x127   : > { %1990 = vmatpush3.bf16.msra.mxu0 %v2498_v3  ;;  %2291 = vmatpush3.bf16.msra.mxu1 %v2498_v3  ;;  %v513_v48 = vld [vmem:[#allocation2 + $0x78] sm:$0xff]  ;;  %v511_v54 = vld [vmem:[#allocation2 + $0x68] sm:$0xff]  ;;  %v984_v1 = vld [vmem:[#allocation11] sm:$0xff] (!%p1741_p8) }
 0x128   : > { %1991 = vmatprep.subr.bf16.mxu0 %v2499_v4  ;;  %2284 = vmatprep.subr.bf16.mxu1 %v2499_v4  ;;  %v985_v2 = vld [vmem:[#allocation11 + $0x8] sm:$0xff] (!%p1741_p8)  ;;  %v807_v3 = vld [vmem:[#allocation9] sm:$0xff] (!%p1741_p8)  ;;  %v986_v6 = vld [vmem:[#allocation11 + $0x10] sm:$0xff] (!%p1741_p8) }
 0x129   : > { %v808_v5 = vld [vmem:[#allocation9 + $0x8] sm:$0xff] (!%p1741_p8) }
 0x12b   : > { %1992 = vmatpush3.bf16.msra.mxu0 %v2499_v4  ;;  %2292 = vmatpush3.bf16.msra.mxu1 %v2499_v4  ;;  %v2217_v4 = vpack.c.bf16 (!%p1741_p8), %v985_v2, %v984_v1  ;;  %v1237_v1 = vld [vmem:[#allocation12 + $0x28] sm:$0xff] (!%p1741_p8) }
 0x12c   : > { %1993 = vmatprep.subr.bf16.mxu0 %v2500_v7  ;;  %2285 = vmatprep.subr.bf16.mxu1 %v2500_v7 }
 0x12f   : > { %1994 = vmatpush3.bf16.msra.mxu0 %v2500_v7  ;;  %2293 = vmatpush3.bf16.msra.mxu1 %v2500_v7  ;;  %v987_v7 = vld [vmem:[#allocation11 + $0x18] sm:$0xff] (!%p1741_p8) }
 0x130   : > { %1995 = vmatprep.subr.bf16.mxu0 %v2501_v8  ;;  %2286 = vmatprep.subr.bf16.mxu1 %v2501_v8 }
 0x133   : > { %1996 = vmatpush3.bf16.msra.mxu0 %v2501_v8  ;;  %2294 = vmatpush3.bf16.msra.mxu1 %v2501_v8  ;;  %v2185_v8 = vpack.c.bf16 (!%p1741_p8), %v808_v5, %v807_v3 }
 0x134   : > { %1997 = vmatprep.subr.bf16.mxu0 %v2502_v9  ;;  %2287 = vmatprep.subr.bf16.mxu1 %v2502_v9 }
 0x137   : > { %1998 = vmatpush3.bf16.msra.mxu0 %v2502_v9  ;;  %2295 = vmatpush3.bf16.msra.mxu1 %v2502_v9  ;;  %v2221_v9 = vpack.c.bf16 (!%p1741_p8), %v987_v7, %v986_v6  ;;  %v1861_v6 = vld [vmem:[%s3354_s5 + $0x18] sm:$0xff] (!%p1741_p8)  }
 0x138   : > { %1999 = vmatprep.subr.bf16.mxu0 %v2503_v10  ;;  %2288 = vmatprep.subr.bf16.mxu1 %v2503_v10 }
 0x13b   : > { %2000 = vmatpush3.bf16.msra.mxu0 %v2503_v10  ;;  %2296 = vmatpush3.bf16.msra.mxu1 %v2503_v10  ;;  %v809_v10 = vld [vmem:[#allocation9 + $0x10] sm:$0xff] (!%p1741_p8) }
 0x13c   : > { %2218 = vmatprep.subr.bf16.mxu1 (!%p1741_p8), %v2217_v4  ;;  %2186 = vmatprep.subr.bf16.mxu0 (!%p1741_p8), %v2185_v8 }
 0x13e   : > { %2002 = vmatmul.mubr.bf16.vlgmr.msra.gmra.mrb[0].mxu0 %v2506_v11  ;;  %2010 = vmatmul.mubr.bf16.vlgmr.msra.gmra.mrb[0].mxu1 %v2507_v12  ;;  %v810_v11 = vld [vmem:[#allocation9 + $0x18] sm:$0xff] (!%p1741_p8)  ;;  %v988_v12 = vld [vmem:[#allocation11 + $0x20] sm:$0xff] (!%p1741_p8) }
 0x13f   : > { %2005 = vmatprep.mubr.bf16.mxu0 %v2508_v13  ;;  %2013 = vmatprep.mubr.bf16.mxu1 %v2509_v14  ;;  %v2189_v13 = vpack.c.bf16 (!%p1741_p8), %v810_v11, %v809_v10  ;;  %v989_v14 = vld [vmem:[#allocation11 + $0x28] sm:$0xff] (!%p1741_p8) }
 0x140   : > { %2220 = vmatpush3.bf16.msra.mxu1 (!%p1741_p8), %v2217_v4  ;;  %2188 = vmatpush3.bf16.msra.mxu0 (!%p1741_p8), %v2185_v8  ;;  %v1238_v8 = vld [vmem:[#allocation12 + $0x30] sm:$0xff] (!%p1741_p8) }
 0x141   : > { %2222 = vmatprep.subr.bf16.mxu1 (!%p1741_p8), %v2221_v9  ;;  %2190 = vmatprep.subr.bf16.mxu0 (!%p1741_p8), %v2189_v13 }
 0x144   : > { %2224 = vmatpush3.bf16.msra.mxu1 (!%p1741_p8), %v2221_v9  ;;  %2192 = vmatpush3.bf16.msra.mxu0 (!%p1741_p8), %v2189_v13  ;;  %v1239_v9 = vld [vmem:[#allocation12 + $0x38] sm:$0xff] (!%p1741_p8)  ;;  %v1801_v13 = vunpack.c.l.bf16 (!%p1741_p8), %v1861_v6 }
 0x146   : > { %2006 = vmatmul.mubr.bf16.gmra.mrb[4].mxu0 %v2510_v15  ;;  %2014 = vmatmul.mubr.bf16.gmra.mrb[4].mxu1 %v2511_v16  ;;  %v811_v15 = vld [vmem:[#allocation9 + $0x20] sm:$0xff] (!%p1741_p8)  ;;  %v812_v16 = vld [vmem:[#allocation9 + $0x28] sm:$0xff] (!%p1741_p8) }
 0x211   : > { %v2003_v21 = vpop.f32.mrb[0].mxu0  ;;  %v2011_v22 = vpop.f32.mrb[0].mxu1 }
 0x212   : > { %v741_v25 = vadd.f32 %v2003_v21, %v500_v17  ;;  %v749_v26 = vadd.f32 %v2011_v22, %v508_v18  ;;  %v676_v27 = vpop.f32.mrb[1].mxu0  ;;  %v708_v28 = vpop.f32.mrb[1].mxu1  ;;  %v2225_v17 = vpack.c.bf16 (!%p1741_p8), %v989_v14, %v988_v12  ;;  %v2193_v18 = vpack.c.bf16 (!%p1741_p8), %v812_v16, %v811_v15  ;;  %v813_v21 = vld [vmem:[#allocation9 + $0x30] sm:$0xff] (!%p1741_p8)  ;;  %v814_v22 = vld [vmem:[#allocation9 + $0x38] sm:$0xff] (!%p1741_p8)  ;;  %v1862_v14 = vld [vmem:[%s3354_s5 + $0x20] sm:$0xff] (!%p1741_p8)  }
 0x213   : > { %v739_v31 = vadd.f32 %v676_v27, %v498_v19  ;;  %v747_v32 = vadd.f32 %v708_v28, %v506_v20  ;;  %v2004_v33 = vpop.f32.mrb[2].mxu0  ;;  %v2012_v34 = vpop.f32.mrb[2].mxu1  ;;  %v990_v19 = vld [vmem:[#allocation11 + $0x30] sm:$0xff] (!%p1741_p8)  ;;  %v991_v20 = vld [vmem:[#allocation11 + $0x38] sm:$0xff] (!%p1741_p8)  ;;  %v815_v28 = vld [vmem:[#allocation9 + $0x40] sm:$0xff] (!%p1741_p8)  ;;  %v2261_v15 = vpack.c.bf16 (!%p1741_p8), %v1239_v9, %v1238_v8 }
 0x214   : > { %757 = vst [vmem:[#allocation2 + $0x10] sm:$0xff] %v741_v25  ;;  %765 = vst [vmem:[#allocation2 + $0x50] sm:$0xff] %v749_v26  ;;  %v742_v35 = vadd.f32 %v2004_v33, %v501_v23  ;;  %v750_v36 = vadd.f32 %v2012_v34, %v509_v24  ;;  %v679_v37 = vpop.f32.mrb[3].mxu0  ;;  %v711_v38 = vpop.f32.mrb[3].mxu1  ;;  %2226 = vmatprep.subr.bf16.mxu1 (!%p1741_p8), %v2225_v17  ;;  %v2229_v23 = vpack.c.bf16 (!%p1741_p8), %v991_v20, %v990_v19  ;;  %v992_v25 = vld [vmem:[#allocation11 + $0x40] sm:$0xff] (!%p1741_p8)  ;;  %v993_v26 = vld [vmem:[#allocation11 + $0x48] sm:$0xff] (!%p1741_p8) }
 0x215   : > { %755 = vst [vmem:[#allocation2] sm:$0xff] %v739_v31  ;;  %763 = vst [vmem:[#allocation2 + $0x40] sm:$0xff] %v747_v32  ;;  %v740_v39 = vadd.f32 %v679_v37, %v499_v29  ;;  %v748_v40 = vadd.f32 %v711_v38, %v507_v30  ;;  %2194 = vmatprep.subr.bf16.mxu0 (!%p1741_p8), %v2193_v18  ;;  %v2197_v24 = vpack.c.bf16 (!%p1741_p8), %v814_v22, %v813_v21  ;;  %v816_v29 = vld [vmem:[#allocation9 + $0x48] sm:$0xff] (!%p1741_p8)  ;;  %v1788_v30 = vld [vmem:[%s3354_s5] sm:$0xff] (!%p1741_p8)  }
 0x216   : > { %758 = vst [vmem:[#allocation2 + $0x18] sm:$0xff] %v742_v35  ;;  %766 = vst [vmem:[#allocation2 + $0x58] sm:$0xff] %v750_v36  ;;  %2228 = vmatpush3.bf16.msra.mxu1 (!%p1741_p8), %v2225_v17  ;;  %v1789_v31 = vunpack.c.l.bf16 (!%p1741_p8), %v1788_v30  ;;  %2196 = vmatpush3.bf16.msra.mxu0 (!%p1741_p8), %v2193_v18  ;;  %v2233_v32 = vpack.c.bf16 (!%p1741_p8), %v993_v26, %v992_v25  ;;  %v2201_v33 = vpack.c.bf16 (!%p1741_p8), %v816_v29, %v815_v28  ;;  %v994_v34 = vld [vmem:[#allocation11 + $0x50] sm:$0xff] (!%p1741_p8)  ;;  %v995_v35 = vld [vmem:[#allocation11 + $0x58] sm:$0xff] (!%p1741_p8) }
 0x217   : > { %756 = vst [vmem:[#allocation2 + $0x8] sm:$0xff] %v740_v39  ;;  %764 = vst [vmem:[#allocation2 + $0x48] sm:$0xff] %v748_v40  ;;  %2230 = vmatprep.subr.bf16.mxu1 (!%p1741_p8), %v2229_v23  ;;  %2198 = vmatprep.subr.bf16.mxu0 (!%p1741_p8), %v2197_v24  ;;  %v817_v36 = vld [vmem:[#allocation9 + $0x50] sm:$0xff] (!%p1741_p8)  ;;  %v818_v37 = vld [vmem:[#allocation9 + $0x58] sm:$0xff] (!%p1741_p8)  ;;  %v2237_v38 = vpack.c.bf16 (!%p1741_p8), %v995_v35, %v994_v34  ;;  %v1802_v19 = vunpack.c.h.bf16 (!%p1741_p8), %v1861_v6  ;;  %v1805_v21 = vunpack.c.l.bf16 (!%p1741_p8), %v1862_v14 }
 0x218   : > { %2049 = vmatprep.mubr.f32.mxu0 (!%p1741_p8), %v1789_v31  ;;  %v2205_v39 = vpack.c.bf16 (!%p1741_p8), %v818_v37, %v817_v36  ;;  %v996_v40 = vld [vmem:[#allocation11 + $0x60] sm:$0xff] (!%p1741_p8)  ;;  %v1241_v17 = vld [vmem:[#allocation12 + $0x48] sm:$0xff] (!%p1741_p8)  ;;  %v1243_v25 = vld [vmem:[#allocation12 + $0x58] sm:$0xff] (!%p1741_p8) }
 0x219   : > { %v2007_v45 = vpop.f32.mrb[4].mxu0  ;;  %v2015_v46 = vpop.f32.mrb[4].mxu1  ;;  %774 = sbr.rel (%p1741_p8) target bundleno = 1023 (0x3ff), region = 80  ;;  %v1240_v16 = vld [vmem:[#allocation12 + $0x40] sm:$0xff] (!%p1741_p8)  ;;  %v1863_v22 = vld [vmem:[%s3354_s5 + $0x28] sm:$0xff] (!%p1741_p8)   ;;  %v1865_v36 = vld [vmem:[%s3354_s5 + $0x38] sm:$0xff] (!%p1741_p8)  }
 0x21a   : > { %v745_v49 = vadd.f32 %v2007_v45, %v504_v41  ;;  %v753_v50 = vadd.f32 %v2015_v46, %v512_v42  ;;  %v692_v51 = vpop.f32.mrb[5].mxu0  ;;  %v724_v52 = vpop.f32.mrb[5].mxu1  ;;  %2232 = vmatpush3.bf16.msra.mxu1 (!%p1741_p8), %v2229_v23  ;;  %2200 = vmatpush3.bf16.msra.mxu0 (!%p1741_p8), %v2197_v24  ;;  %v997_v41 = vld [vmem:[#allocation11 + $0x68] sm:$0xff] (!%p1741_p8)  ;;  %v819_v42 = vld [vmem:[#allocation9 + $0x60] sm:$0xff] (!%p1741_p8)  ;;  %v998_v46 = vld [vmem:[#allocation11 + $0x70] sm:$0xff] (!%p1741_p8)  ;;  %v2265_v23 = vpack.c.bf16 (!%p1741_p8), %v1241_v17, %v1240_v16  ;;  %v1809_v29 = vunpack.c.l.bf16 (!%p1741_p8), %v1863_v22 }
 0x21b   : > { %v743_v55 = vadd.f32 %v692_v51, %v502_v43  ;;  %v751_v56 = vadd.f32 %v724_v52, %v510_v44  ;;  %v2008_v57 = vpop.f32.mrb[6].mxu0  ;;  %v2016_v58 = vpop.f32.mrb[6].mxu1  ;;  %2234 = vmatprep.subr.bf16.mxu1 (!%p1741_p8), %v2233_v32  ;;  %2202 = vmatprep.subr.bf16.mxu0 (!%p1741_p8), %v2201_v33  ;;  %v820_v43 = vld [vmem:[#allocation9 + $0x68] sm:$0xff] (!%p1741_p8)  ;;  %v2241_v44 = vpack.c.bf16 (!%p1741_p8), %v997_v41, %v996_v40  ;;  %v1232_v52 = vld [vmem:[#allocation12] sm:$0xff] (!%p1741_p8)  ;;  %v1242_v24 = vld [vmem:[#allocation12 + $0x50] sm:$0xff] (!%p1741_p8)  ;;  %v1817_v40 = vunpack.c.l.bf16 (!%p1741_p8), %v1865_v36 }
 0x21c   : > { %761 = vst [vmem:[#allocation2 + $0x30] sm:$0xff] %v745_v49  ;;  %769 = vst [vmem:[#allocation2 + $0x70] sm:$0xff] %v753_v50  ;;  %v746_v59 = vadd.f32 %v2008_v57, %v505_v47  ;;  %v754_v60 = vadd.f32 %v2016_v58, %v513_v48  ;;  %v695_v61 = vpop.f32.mrb[7].mxu0  ;;  %v727_v62 = vpop.f32.mrb[7].mxu1  ;;  %v968_v27 = vld [vmem:[#allocation2] sm:$0xff] (!%p1741_p8)  ;;  %v2209_v45 = vpack.c.bf16 (!%p1741_p8), %v820_v43, %v819_v42  ;;  %v999_v47 = vld [vmem:[#allocation11 + $0x78] sm:$0xff] (!%p1741_p8)  ;;  %v1790_v58 = vunpack.c.h.bf16 (!%p1741_p8), %v1788_v30 }
 0x21d   : > { %759 = vst [vmem:[#allocation2 + $0x20] sm:$0xff] %v743_v55  ;;  %767 = vst [vmem:[#allocation2 + $0x60] sm:$0xff] %v751_v56  ;;  %v744_v63 = vadd.f32 %v695_v61, %v503_v53  ;;  %v752_v0 = vadd.f32 %v727_v62, %v511_v54  ;;  %2105 = vmatprep.mubr.f32.mxu1 (!%p1741_p8), %v968_v27  ;;  %v821_v48 = vld [vmem:[#allocation9 + $0x70] sm:$0xff] (!%p1741_p8)  ;;  %v822_v49 = vld [vmem:[#allocation9 + $0x78] sm:$0xff] (!%p1741_p8)  ;;  %v2245_v50 = vpack.c.bf16 (!%p1741_p8), %v999_v47, %v998_v46 }
 0x21e   : > { %762 = vst [vmem:[#allocation2 + $0x38] sm:$0xff] %v746_v59  ;;  %770 = vst [vmem:[#allocation2 + $0x78] sm:$0xff] %v754_v60  ;;  %2236 = vmatpush3.bf16.msra.mxu1 (!%p1741_p8), %v2233_v32  ;;  %2204 = vmatpush3.bf16.msra.mxu0 (!%p1741_p8), %v2201_v33  ;;  %v2213_v51 = vpack.c.bf16 (!%p1741_p8), %v822_v49, %v821_v48  ;;  %v1233_v53 = vld [vmem:[#allocation12 + $0x8] sm:$0xff] (!%p1741_p8)  ;;  %v1234_v56 = vld [vmem:[#allocation12 + $0x10] sm:$0xff] (!%p1741_p8)  ;;  %v1806_v27 = vunpack.c.h.bf16 (!%p1741_p8), %v1862_v14  ;;  %v2269_v31 = vpack.c.bf16 (!%p1741_p8), %v1243_v25, %v1242_v24 }
 0x21f   : > { %760 = vst [vmem:[#allocation2 + $0x28] sm:$0xff] %v744_v63  ;;  %768 = vst [vmem:[#allocation2 + $0x68] sm:$0xff] %v752_v0  ;;  %2238 = vmatprep.subr.bf16.mxu1 (!%p1741_p8), %v2237_v38  ;;  %2206 = vmatprep.subr.bf16.mxu0 (!%p1741_p8), %v2205_v39  ;;  %v1859_v54 = vld [vmem:[%s3354_s5 + $0x8] sm:$0xff] (!%p1741_p8)   ;;  %v2249_v55 = vpack.c.bf16 (!%p1741_p8), %v1233_v53, %v1232_v52  ;;  %v1235_v57 = vld [vmem:[#allocation12 + $0x18] sm:$0xff] (!%p1741_p8)  ;;  %v1810_v33 = vunpack.c.h.bf16 (!%p1741_p8), %v1863_v22  ;;  %v1818_v42 = vunpack.c.h.bf16 (!%p1741_p8), %v1865_v36 }
 0x220   : > { %v969_v59 = vld [vmem:[#allocation2 + $0x8] sm:$0xff]  ;;  %v970_v60 = vld [vmem:[#allocation2 + $0x10] sm:$0xff]  ;;  %v1793_v61 = vunpack.c.l.bf16 %v1859_v54  ;;  %v2253_v63 = vpack.c.bf16 %v1235_v57, %v1234_v56  ;;  %v1236_v0 = vld [vmem:[#allocation12 + $0x20] sm:$0xff]  ;;  %v1794_v3 = vunpack.c.h.bf16 %v1859_v54 }
 0x221   : > { %v1860_v62 = vld [vmem:[%s3354_s5 + $0x10] sm:$0xff]   ;;  %v971_v2 = vld [vmem:[#allocation2 + $0x18] sm:$0xff]  ;;  %v2257_v7 = vpack.c.bf16 %v1237_v1, %v1236_v0  ;;  %v976_v20 = vld [vmem:[#allocation2 + $0x40] sm:$0xff] }
 0x222   : > { %2240 = vmatpush3.bf16.msra.mxu1 %v2237_v38  ;;  %2208 = vmatpush3.bf16.msra.mxu0 %v2205_v39  ;;  %v1797_v5 = vunpack.c.l.bf16 %v1860_v62  ;;  %v1798_v11 = vunpack.c.h.bf16 %v1860_v62  ;;  %v977_v26 = vld [vmem:[#allocation2 + $0x48] sm:$0xff]  ;;  %v978_v28 = vld [vmem:[#allocation2 + $0x50] sm:$0xff]  ;;  %v979_v32 = vld [vmem:[#allocation2 + $0x58] sm:$0xff] }
 0x223   : > { %2242 = vmatprep.subr.bf16.mxu1 %v2241_v44  ;;  %2210 = vmatprep.subr.bf16.mxu0 %v2209_v45  ;;  %v974_v12 = vld [vmem:[#allocation2 + $0x30] sm:$0xff]  ;;  %v1244_v43 = vld [vmem:[#allocation12 + $0x60] sm:$0xff]  ;;  %v1247_v47 = vld [vmem:[#allocation12 + $0x78] sm:$0xff] }
 0x224   : > { %v972_v4 = vld [vmem:[#allocation2 + $0x20] sm:$0xff]  ;;  %v1864_v30 = vld [vmem:[%s3354_s5 + $0x30] sm:$0xff]  }
 0x225   : > { %v975_v18 = vld [vmem:[#allocation2 + $0x38] sm:$0xff]  ;;  %v980_v34 = vld [vmem:[#allocation2 + $0x60] sm:$0xff]  ;;  %v1813_v35 = vunpack.c.l.bf16 %v1864_v30  ;;  %v1814_v38 = vunpack.c.h.bf16 %v1864_v30  ;;  %v982_v39 = vld [vmem:[#allocation2 + $0x70] sm:$0xff] }
 0x226   : > { %2244 = vmatpush3.bf16.msra.mxu1 %v2241_v44  ;;  %2212 = vmatpush3.bf16.msra.mxu0 %v2209_v45  ;;  %v973_v10 = vld [vmem:[#allocation2 + $0x28] sm:$0xff]  ;;  %v983_v41 = vld [vmem:[#allocation2 + $0x78] sm:$0xff]  ;;  %v1246_v46 = vld [vmem:[#allocation12 + $0x70] sm:$0xff] }
 0x227   : > { %2246 = vmatprep.subr.bf16.mxu1 %v2245_v50  ;;  %2214 = vmatprep.subr.bf16.mxu0 %v2213_v51  ;;  %v981_v37 = vld [vmem:[#allocation2 + $0x68] sm:$0xff]  ;;  %v2277_v48 = vpack.c.bf16 %v1247_v47, %v1246_v46  ;;  %v3402_v53 = vld [vmem:[%s3665_s10] ss:$0 sm:$0xff] }
 0x228   : > { %v1245_v44 = vld [vmem:[#allocation12 + $0x68] sm:$0xff] }
 0x229   : > { %v2273_v45 = vpack.c.bf16 %v1245_v44, %v1244_v43 }
 0x22a   : > { %2248 = vmatpush3.bf16.msra.mxu1 %v2245_v50  ;;  %2216 = vmatpush3.bf16.msra.mxu0 %v2213_v51 }
 0x22b   : > { %2297 = vmatprep.subr.bf16.mxu1 %v2249_v55  ;;  %2250 = vmatprep.subr.bf16.mxu0 %v2249_v55 }
 0x22d   : > { %2106 = vmatmul.mubr.f32.vlgmr.msra.gmra.mrb[0].mxu1 %v969_v59  ;;  %2050 = vmatmul.mubr.f32.vlgmr.msra.gmra.mrb[0].mxu0 %v1790_v58 }
 0x22e   : > { %2108 = vmatprep.mubr.f32.mxu1 %v970_v60  ;;  %2052 = vmatprep.mubr.f32.mxu0 %v1793_v61 }
 0x22f   : > { %2252 = vmatpush3.bf16.msra.mxu0 %v2249_v55  ;;  %2305 = vmatpush3.bf16.msra.mxu1 %v2249_v55 }
 0x230   : > { %2254 = vmatprep.subr.bf16.mxu0 %v2253_v63  ;;  %2298 = vmatprep.subr.bf16.mxu1 %v2253_v63 }
 0x231   : > { %2109 = vmatmul.mubr.f32.gmra.mrb[2].mxu1 %v971_v2  ;;  %2053 = vmatmul.mubr.f32.gmra.mrb[2].mxu0 %v1794_v3 }
 0x232   : > { %2111 = vmatprep.mubr.f32.mxu1 %v972_v4  ;;  %2055 = vmatprep.mubr.f32.mxu0 %v1797_v5 }
 0x233   : > { %2256 = vmatpush3.bf16.msra.mxu0 %v2253_v63  ;;  %2306 = vmatpush3.bf16.msra.mxu1 %v2253_v63 }
 0x234   : > { %2258 = vmatprep.subr.bf16.mxu0 %v2257_v7  ;;  %2299 = vmatprep.subr.bf16.mxu1 %v2257_v7 }
 0x235   : > { %2112 = vmatmul.mubr.f32.gmra.mrb[4].mxu1 %v973_v10  ;;  %2056 = vmatmul.mubr.f32.gmra.mrb[4].mxu0 %v1798_v11 }
 0x236   : > { %2114 = vmatprep.mubr.f32.mxu1 %v974_v12  ;;  %2058 = vmatprep.mubr.f32.mxu0 %v1801_v13 }
 0x237   : > { %2260 = vmatpush3.bf16.msra.mxu0 %v2257_v7  ;;  %2307 = vmatpush3.bf16.msra.mxu1 %v2257_v7 }
 0x238   : > { %2262 = vmatprep.subr.bf16.mxu0 %v2261_v15  ;;  %2300 = vmatprep.subr.bf16.mxu1 %v2261_v15 }
 0x239   : > { %2115 = vmatmul.mubr.f32.gmra.mrb[6].mxu1 %v975_v18  ;;  %2059 = vmatmul.mubr.f32.gmra.mrb[6].mxu0 %v1802_v19 }
 0x23a   : > { %2117 = vmatprep.mubr.f32.mxu1 %v976_v20  ;;  %2061 = vmatprep.mubr.f32.mxu0 %v1805_v21 }
 0x23b   : > { %2264 = vmatpush3.bf16.msra.mxu0 %v2261_v15  ;;  %2308 = vmatpush3.bf16.msra.mxu1 %v2261_v15 }
 0x23c   : > { %2266 = vmatprep.subr.bf16.mxu0 %v2265_v23  ;;  %2301 = vmatprep.subr.bf16.mxu1 %v2265_v23 }
 0x23d   : > { %2118 = vmatmul.mubr.f32.gmra.mrb[8].mxu1 %v977_v26  ;;  %2062 = vmatmul.mubr.f32.gmra.mrb[8].mxu0 %v1806_v27 }
 0x23e   : > { %2120 = vmatprep.mubr.f32.mxu1 %v978_v28  ;;  %2064 = vmatprep.mubr.f32.mxu0 %v1809_v29 }
 0x23f   : > { %2268 = vmatpush3.bf16.msra.mxu0 %v2265_v23  ;;  %2309 = vmatpush3.bf16.msra.mxu1 %v2265_v23 }
 0x240   : > { %2270 = vmatprep.subr.bf16.mxu0 %v2269_v31  ;;  %2302 = vmatprep.subr.bf16.mxu1 %v2269_v31 }
 0x241   : > { %2121 = vmatmul.mubr.f32.gmra.mrb[10].mxu1 %v979_v32  ;;  %2065 = vmatmul.mubr.f32.gmra.mrb[10].mxu0 %v1810_v33 }
 0x242   : > { %2123 = vmatprep.mubr.f32.mxu1 %v980_v34  ;;  %2067 = vmatprep.mubr.f32.mxu0 %v1813_v35 }
 0x243   : > { %2272 = vmatpush3.bf16.msra.mxu0 %v2269_v31  ;;  %2310 = vmatpush3.bf16.msra.mxu1 %v2269_v31 }
 0x244   : > { %2274 = vmatprep.subr.bf16.mxu0 %v2273_v45  ;;  %2303 = vmatprep.subr.bf16.mxu1 %v2273_v45 }
 0x245   : > { %2124 = vmatmul.mubr.f32.gmra.mrb[12].mxu1 %v981_v37  ;;  %2068 = vmatmul.mubr.f32.gmra.mrb[12].mxu0 %v1814_v38 }
 0x246   : > { %2126 = vmatprep.mubr.f32.mxu1 %v982_v39  ;;  %2070 = vmatprep.mubr.f32.mxu0 %v1817_v40 }
 0x247   : > { %2276 = vmatpush3.bf16.msra.mxu0 %v2273_v45  ;;  %2311 = vmatpush3.bf16.msra.mxu1 %v2273_v45 }
 0x248   : > { %2278 = vmatprep.subr.bf16.mxu0 %v2277_v48  ;;  %2304 = vmatprep.subr.bf16.mxu1 %v2277_v48 }
 0x249   : > { %2127 = vmatmul.mubr.f32.gmra.mrb[14].mxu1 %v983_v41  ;;  %2071 = vmatmul.mubr.f32.gmra.mrb[14].mxu0 %v1818_v42 }
 0x24b   : > { %2280 = vmatpush3.bf16.msra.mxu0 %v2277_v48  ;;  %2312 = vmatpush3.bf16.msra.mxu1 %v2277_v48 }
 0x300   : > { %v2107_v49 = vpop.f32.mrb[0].mxu1  ;;  %v2051_v51 = vpop.f32.mrb[0].mxu0 }
 0x301   : > { %v1146_v50 = vmul.f32 1.6980058, %v2107_v49  ;;  %v1066_v52 = vpop.f32.mrb[1].mxu1  ;;  %v889_v55 = vpop.f32.mrb[1].mxu0 }
 0x302   : > { %v1145_v54 = vmul.f32 1.6980058, %v1066_v52 }
 0x303   : > { %v1162_v56 = vsub.f32 %v2051_v51, %v1146_v50 }
 0x304   : > { %v1161_v57 = vsub.f32 %v889_v55, %v1145_v54  ;;  %v2110_v58 = vpop.f32.mrb[2].mxu1  ;;  %v2054_v61 = vpop.f32.mrb[2].mxu0 }
 0x305   : > { %v1185_v59 = vadd.f32 %v3402_v53, %v1162_v56  ;;  %v1148_v60 = vmul.f32 1.6980058, %v2110_v58  ;;  %v1076_v62 = vpop.f32.mrb[3].mxu1  ;;  %v899_v1 = vpop.f32.mrb[3].mxu0 }
 0x306   : > { %v1184_v63 = vadd.f32 %v3402_v53, %v1161_v57  ;;  %v1147_v0 = vmul.f32 1.6980058, %v1076_v62 }
 0x307   : > { %v1201_v2 = vmax.f32 %v1185_v59, 0.0  ;;  %v1164_v3 = vsub.f32 %v2054_v61, %v1148_v60 }
 0x308   : > { %v1200_v4 = vmax.f32 %v1184_v63, 0.0  ;;  %v1163_v5 = vsub.f32 %v899_v1, %v1147_v0  ;;  %v2113_v6 = vpop.f32.mrb[4].mxu1  ;;  %v2057_v9 = vpop.f32.mrb[4].mxu0 }
 0x309   : > { %1217 = vst [vmem:[%s3369_s24 + $0x8] sm:$0xff] %v1201_v2  ;;  %v1187_v7 = vadd.f32 %v3402_v53, %v1164_v3  ;;  %v1150_v8 = vmul.f32 1.6980058, %v2113_v6  ;;  %v1086_v10 = vpop.f32.mrb[5].mxu1  ;;  %v909_v13 = vpop.f32.mrb[5].mxu0 }
 0x30a   : > { %1216 = vst [vmem:[%s3369_s24] sm:$0xff] %v1200_v4  ;;  %v1186_v11 = vadd.f32 %v3402_v53, %v1163_v5  ;;  %v1149_v12 = vmul.f32 1.6980058, %v1086_v10  ;;  %2161 = vmatprep.mubr.f32.mxu0 %v1200_v4 }
 0x30b   : > { %v1203_v14 = vmax.f32 %v1187_v7, 0.0  ;;  %v1166_v15 = vsub.f32 %v2057_v9, %v1150_v8  ;;  %2162 = vmatmul.mubr.f32.vlgmr.msra.gmra.mrb[16].mxu0 %v1201_v2 }
 0x30c   : > { %v1202_v16 = vmax.f32 %v1186_v11, 0.0  ;;  %v1165_v17 = vsub.f32 %v909_v13, %v1149_v12  ;;  %v2116_v18 = vpop.f32.mrb[6].mxu1  ;;  %v2060_v21 = vpop.f32.mrb[6].mxu0 }
 0x30d   : > { %1219 = vst [vmem:[%s3369_s24 + $0x18] sm:$0xff] %v1203_v14  ;;  %v1189_v19 = vadd.f32 %v3402_v53, %v1166_v15  ;;  %v1152_v20 = vmul.f32 1.6980058, %v2116_v18  ;;  %v1096_v22 = vpop.f32.mrb[7].mxu1  ;;  %v919_v25 = vpop.f32.mrb[7].mxu0 }
 0x30e   : > { %1218 = vst [vmem:[%s3369_s24 + $0x10] sm:$0xff] %v1202_v16  ;;  %v1188_v23 = vadd.f32 %v3402_v53, %v1165_v17  ;;  %v1151_v24 = vmul.f32 1.6980058, %v1096_v22  ;;  %2164 = vmatprep.mubr.f32.mxu0 %v1202_v16 }
 0x30f   : > { %v1205_v26 = vmax.f32 %v1189_v19, 0.0  ;;  %v1168_v27 = vsub.f32 %v2060_v21, %v1152_v20  ;;  %2165 = vmatmul.mubr.f32.gmra.mrb[18].mxu0 %v1203_v14 }
 0x310   : > { %v1204_v28 = vmax.f32 %v1188_v23, 0.0  ;;  %v1167_v29 = vsub.f32 %v919_v25, %v1151_v24  ;;  %v2119_v30 = vpop.f32.mrb[8].mxu1  ;;  %v2063_v33 = vpop.f32.mrb[8].mxu0 }
 0x311   : > { %1221 = vst [vmem:[%s3369_s24 + $0x28] sm:$0xff] %v1205_v26  ;;  %v1191_v31 = vadd.f32 %v3402_v53, %v1168_v27  ;;  %v1154_v32 = vmul.f32 1.6980058, %v2119_v30  ;;  %v1106_v34 = vpop.f32.mrb[9].mxu1  ;;  %v929_v37 = vpop.f32.mrb[9].mxu0 }
 0x312   : > { %1220 = vst [vmem:[%s3369_s24 + $0x20] sm:$0xff] %v1204_v28  ;;  %v1190_v35 = vadd.f32 %v3402_v53, %v1167_v29  ;;  %v1153_v36 = vmul.f32 1.6980058, %v1106_v34  ;;  %2167 = vmatprep.mubr.f32.mxu0 %v1204_v28 }
 0x313   : > { %v1207_v38 = vmax.f32 %v1191_v31, 0.0  ;;  %v1170_v39 = vsub.f32 %v2063_v33, %v1154_v32  ;;  %2168 = vmatmul.mubr.f32.gmra.mrb[20].mxu0 %v1205_v26 }
 0x314   : > { %v1206_v40 = vmax.f32 %v1190_v35, 0.0  ;;  %v1169_v41 = vsub.f32 %v929_v37, %v1153_v36  ;;  %v2122_v42 = vpop.f32.mrb[10].mxu1  ;;  %v2066_v45 = vpop.f32.mrb[10].mxu0 }
 0x315   : > { %1223 = vst [vmem:[%s3369_s24 + $0x38] sm:$0xff] %v1207_v38  ;;  %v1193_v43 = vadd.f32 %v3402_v53, %v1170_v39  ;;  %v1156_v44 = vmul.f32 1.6980058, %v2122_v42  ;;  %v1116_v46 = vpop.f32.mrb[11].mxu1  ;;  %v939_v49 = vpop.f32.mrb[11].mxu0 }
 0x316   : > { %1222 = vst [vmem:[%s3369_s24 + $0x30] sm:$0xff] %v1206_v40  ;;  %v1192_v47 = vadd.f32 %v3402_v53, %v1169_v41  ;;  %v1155_v48 = vmul.f32 1.6980058, %v1116_v46  ;;  %2170 = vmatprep.mubr.f32.mxu0 %v1206_v40 }
 0x317   : > { %v1209_v50 = vmax.f32 %v1193_v43, 0.0  ;;  %v1172_v51 = vsub.f32 %v2066_v45, %v1156_v44  ;;  %2171 = vmatmul.mubr.f32.gmra.mrb[22].mxu0 %v1207_v38 }
 0x318   : > { %v1208_v52 = vmax.f32 %v1192_v47, 0.0  ;;  %v1171_v54 = vsub.f32 %v939_v49, %v1155_v48  ;;  %v2125_v55 = vpop.f32.mrb[12].mxu1  ;;  %v2069_v58 = vpop.f32.mrb[12].mxu0 }
 0x319   : > { %1225 = vst [vmem:[%s3369_s24 + $0x48] sm:$0xff] %v1209_v50  ;;  %v1195_v56 = vadd.f32 %v3402_v53, %v1172_v51  ;;  %v1158_v57 = vmul.f32 1.6980058, %v2125_v55  ;;  %v1126_v59 = vpop.f32.mrb[13].mxu1  ;;  %v949_v62 = vpop.f32.mrb[13].mxu0 }
 0x31a   : > { %1224 = vst [vmem:[%s3369_s24 + $0x40] sm:$0xff] %v1208_v52  ;;  %v1194_v60 = vadd.f32 %v3402_v53, %v1171_v54  ;;  %v1157_v61 = vmul.f32 1.6980058, %v1126_v59  ;;  %2173 = vmatprep.mubr.f32.mxu1 %v1208_v52 }
 0x31b   : > { %v1211_v63 = vmax.f32 %v1195_v56, 0.0  ;;  %v1174_v0 = vsub.f32 %v2069_v58, %v1158_v57  ;;  %2174 = vmatmul.mubr.f32.vlgmr.msra.gmra.mrb[16].mxu1 %v1209_v50 }
 0x31c   : > { %v1210_v1 = vmax.f32 %v1194_v60, 0.0  ;;  %v1173_v2 = vsub.f32 %v949_v62, %v1157_v61  ;;  %v2128_v3 = vpop.f32.mrb[14].mxu1  ;;  %v2072_v6 = vpop.f32.mrb[14].mxu0 }
 0x31d   : > { %1227 = vst [vmem:[%s3369_s24 + $0x58] sm:$0xff] %v1211_v63  ;;  %v1197_v4 = vadd.f32 %v3402_v53, %v1174_v0  ;;  %v1160_v5 = vmul.f32 1.6980058, %v2128_v3  ;;  %v1136_v7 = vpop.f32.mrb[15].mxu1  ;;  %v959_v10 = vpop.f32.mrb[15].mxu0 }
 0x31e   : > { %1226 = vst [vmem:[%s3369_s24 + $0x50] sm:$0xff] %v1210_v1  ;;  %v1196_v8 = vadd.f32 %v3402_v53, %v1173_v2  ;;  %v1159_v9 = vmul.f32 1.6980058, %v1136_v7  ;;  %2176 = vmatprep.mubr.f32.mxu1 %v1210_v1 }
 0x31f   : > { %v1213_v11 = vmax.f32 %v1197_v4, 0.0  ;;  %v1176_v12 = vsub.f32 %v2072_v6, %v1160_v5  ;;  %2177 = vmatmul.mubr.f32.gmra.mrb[18].mxu1 %v1211_v63 }
 0x320   : > { %v1212_v13 = vmax.f32 %v1196_v8, 0.0  ;;  %v1175_v14 = vsub.f32 %v959_v10, %v1159_v9 }
 0x321   : > { %1229 = vst [vmem:[%s3369_s24 + $0x68] sm:$0xff] %v1213_v11  ;;  %v1199_v15 = vadd.f32 %v3402_v53, %v1176_v12 }
 0x322   : > { %1228 = vst [vmem:[%s3369_s24 + $0x60] sm:$0xff] %v1212_v13  ;;  %v1198_v16 = vadd.f32 %v3402_v53, %v1175_v14  ;;  %2179 = vmatprep.mubr.f32.mxu1 %v1212_v13 }
 0x323   : > { %v1215_v17 = vmax.f32 %v1199_v15, 0.0  ;;  %2180 = vmatmul.mubr.f32.gmra.mrb[20].mxu1 %v1213_v11 }
 0x324   : > { %v1214_v18 = vmax.f32 %v1198_v16, 0.0 }
 0x325   : > { %1231 = vst [vmem:[%s3369_s24 + $0x78] sm:$0xff] %v1215_v17 }
 0x326   : > { %1230 = vst [vmem:[%s3369_s24 + $0x70] sm:$0xff] %v1214_v18  ;;  %2182 = vmatprep.mubr.f32.mxu1 %v1214_v18 }
 0x327   : > { %2183 = vmatmul.mubr.f32.gmra.mrb[22].mxu1 %v1215_v17 }
 0x3de   : > { %v2163_v19 = vpop.f32.mrb[16].mxu0 }
 0x3df   : > { %v1314_v20 = vpop.f32.mrb[17].mxu0 }
 0x3e0   : > { %v1822_v21 = vpack.c.bf16 %v2163_v19, %v1314_v20 }
 0x3e2   : > { %1823 = vst [vmem:[%s3371_s23] sm:$0xff] %v1822_v21   ;;  %v2166_v22 = vpop.f32.mrb[18].mxu0 }
 0x3e3   : > { %v1324_v23 = vpop.f32.mrb[19].mxu0 }
 0x3e4   : > { %v1827_v24 = vpack.c.bf16 %v2166_v22, %v1324_v23 }
 0x3e6   : > { %1866 = vst [vmem:[%s3371_s23 + $0x8] sm:$0xff] %v1827_v24   ;;  %v2169_v53 = vpop.f32.mrb[20].mxu0 }
 0x3e7   : > { %v1334_v25 = vpop.f32.mrb[21].mxu0 }
 0x3e8   : > { %v1832_v26 = vpack.c.bf16 %v2169_v53, %v1334_v25 }
 0x3ea   : > { %1867 = vst [vmem:[%s3371_s23 + $0x10] sm:$0xff] %v1832_v26   ;;  %v2172_v27 = vpop.f32.mrb[22].mxu0 }
 0x3eb   : > { %v1344_v28 = vpop.f32.mrb[23].mxu0 }
 0x3ec   : > { %v1837_v29 = vpack.c.bf16 %v2172_v27, %v1344_v28 }
 0x3ee   : > { %1868 = vst [vmem:[%s3371_s23 + $0x18] sm:$0xff] %v1837_v29   ;;  %v2175_v30 = vpop.f32.mrb[16].mxu1 }
 0x3ef   : > { %v1354_v31 = vpop.f32.mrb[17].mxu1 }
 0x3f0   : > { %v1842_v32 = vpack.c.bf16 %v2175_v30, %v1354_v31 }
 0x3f2   : > { %1869 = vst [vmem:[%s3371_s23 + $0x20] sm:$0xff] %v1842_v32   ;;  %v2178_v33 = vpop.f32.mrb[18].mxu1 }
 0x3f3   : > { %v1364_v34 = vpop.f32.mrb[19].mxu1 }
 0x3f4   : > { %v1847_v35 = vpack.c.bf16 %v2178_v33, %v1364_v34 }
 0x3f6   : > { %1870 = vst [vmem:[%s3371_s23 + $0x28] sm:$0xff] %v1847_v35   ;;  %v2181_v36 = vpop.f32.mrb[20].mxu1 }
 0x3f7   : > { %v1374_v37 = vpop.f32.mrb[21].mxu1 }
 0x3f8   : > { %v1852_v38 = vpack.c.bf16 %v2181_v36, %v1374_v37 }
 0x3fa   : > { %1871 = vst [vmem:[%s3371_s23 + $0x30] sm:$0xff] %v1852_v38   ;;  %v2184_v39 = vpop.f32.mrb[22].mxu1 }
 0x3fb   : > { %v1384_v40 = vpop.f32.mrb[23].mxu1 }
 0x3fc   : > { %v1857_v41 = vpack.c.bf16 %v2184_v39, %v1384_v40 }
 0x3fe   : > { %1872 = vst [vmem:[%s3371_s23 + $0x38] sm:$0xff] %v1857_v41  }
 0x3ff PF: > { %s3666_s22 = sld [smem:[#allocation27_spill]]  ;;  %s1492_s0 = sshll.u32 %s3369_s24, 4  ;;  %s3451_s0 = int_to_ptr.vmem [resolvable:$true] %s1492_s0 }
 0x400   : > { %s3667_s14 = sld [smem:[#allocation40_spill]]  ;;  %s1474_s1 = scalar_lea.sflag [#allocation5], %s3351_s8 }
 0x401   : > { %s2686_s19 = scalar_lea.vmem %s3451_s0, 2048  ;;  %p3669_p2 = scmp.ne.s32.totalorder %s3647_s3, 0 }
 0x402   : > { %p2687_p4 = scmp.ne.s32.totalorder %s3451_s0, %s2686_s19  ;;  %s2894_s20 = smov [#allocation14]  }
 0x403   : > { %s2690_s30 = sshll.u32 %s2894_s20, 4  ;;  %s2691_s30 = int_to_ptr.vmem [resolvable:$false] %s2690_s30 }
 0x404   : > { %p2688_p3 = pnand %p2687_p4, %p3669_p2  ;;  %s2692_s10 = scalar_lea.vmem %s2691_s30, 4096 }
 0x405   : > { %s1785_s11 = sshll.u32 %s3666_s22, 11  ;;  %p2693_p12 = scmp.lt.s32.totalorder %s3451_s0, %s2691_s30 }
 0x406   : > { %s3668_s5 = smov %s3667_s14  ;;  %s3448_s9 = scalar_lea.hbm %s3667_s14, %s1785_s11 }
 0x407   : > { %p2689_p5 = pneg %p2688_p3  ;;  %p2694_p9 = scmp.lt.s32.totalorder %s2692_s10, %s2686_s19 }
 0x409   : > { %p2695_p7 = por %p2694_p9, %p2693_p12 }
 0x40b   : > { %p2696_p1 = pnand %p2695_p7, %p2689_p5 }
 0x40d   : > { %2699 = shalt.err (!%p2696_p1)
}
 0x40e   : > { %s2700_s24 = scalar_lea.hbm %s3448_s9, 2048  ;;  %s2704_s2 = scalar_lea.hbm %s3668_s5, 6144 }
 0x40f   : > { %p2701_p13 = scmp.ne.s32.totalorder %s3448_s9, %s2700_s24  ;;  %p2705_p0 = scmp.lt.u32.totalorder %s3448_s9, %s3668_s5 }
 0x410   : > { %p2706_p10 = scmp.lt.u32.totalorder %s2704_s2, %s2700_s24  ;;  %p2708_p4 = scmp.lt.u32.totalorder %s2700_s24, %s3448_s9 }
 0x411   : > { %p2702_p6 = pnand %p2701_p13, %p3669_p2 }
 0x412   : > { %p2707_p8 = por %p2706_p10, %p2705_p0 }
 0x413   : > { %p2703_p11 = pneg %p2702_p6 }
 0x414   : > { %p2709_p3 = por %p2708_p4, %p2707_p8 }
 0x416   : > { %p2710_p5 = pnand %p2709_p3, %p2703_p11 }
 0x418   : > { %2713 = shalt.err (!%p2710_p5)
}
 0x419   : > { %s2895_s19 = smov 128   ;;  %s2896_s30 = smov 8  }
 0x41a   : > { %2332 = dma.vmem_to_hbm [thread:$0]  (%p3669_p2), %s3451_s0, 2048, %s3448_s9, %s1474_s1, %s2895_s19, %s2895_s19, %s2896_s30  }
 0x41b   : > { %s1786_s10 = sshll.u32 %s3666_s22, 10  ;;  %s1508_s11 = sshll.u32 %s3371_s23, 4  ;;  %s3484_s11 = int_to_ptr.vmem [resolvable:$true] %s1508_s11 }
 0x41c   : > { %s3670_s2 = sld [smem:[#allocation41_spill]]  ;;  %s1479_s20 = scalar_lea.sflag [#allocation16], %s3351_s8 }
 0x41d   : > { %s2714_s4 = scalar_lea.vmem %s3484_s11, 1024  ;;  %s2897_s5 = smov [#allocation15]  }
 0x41e   : > { %p2715_p12 = scmp.ne.s32.totalorder %s3484_s11, %s2714_s4  ;;  %s2718_s9 = sshll.u32 %s2897_s5, 4  ;;  %s2719_s9 = int_to_ptr.vmem [resolvable:$false] %s2718_s9 }
 0x41f   : > { %s2720_s23 = scalar_lea.vmem %s2719_s9, 2048  ;;  %p2721_p1 = scmp.lt.s32.totalorder %s3484_s11, %s2719_s9 }
 0x420   : > { %p2716_p9 = pnand %p2715_p12, %p3669_p2  ;;  %p2722_p13 = scmp.lt.s32.totalorder %s2720_s23, %s2714_s4 }
 0x422   : > { %s3482_s14 = scalar_lea.hbm %s3670_s2, %s1786_s10  ;;  %p2717_p7 = pneg %p2716_p9 }
 0x423   : > { %p2723_p6 = por %p2722_p13, %p2721_p1 }
 0x425   : > { %p2724_p11 = pnand %p2723_p6, %p2717_p7 }
 0x427   : > { %2727 = shalt.err (!%p2724_p11)
}
 0x428   : > { %s2728_s22 = scalar_lea.hbm %s3482_s14, 1024  ;;  %s2732_s5 = scalar_lea.hbm %s3670_s2, 3072 }
 0x429   : > { %p2729_p0 = scmp.ne.s32.totalorder %s3482_s14, %s2728_s22  ;;  %p2733_p4 = scmp.lt.u32.totalorder %s3482_s14, %s3670_s2 }
 0x42a   : > { %p2734_p3 = scmp.lt.u32.totalorder %s2732_s5, %s2728_s22  ;;  %p2736_p12 = scmp.lt.u32.totalorder %s2728_s22, %s3482_s14 }
 0x42b   : > { %p2730_p10 = pnand %p2729_p0, %p3669_p2 }
 0x42c   : > { %p2735_p5 = por %p2734_p3, %p2733_p4 }
 0x42d   : > { %p2731_p8 = pneg %p2730_p10 }
 0x42e   : > { %p2737_p9 = por %p2736_p12, %p2735_p5 }
 0x430   : > { %p2738_p7 = pnand %p2737_p9, %p2731_p8 }
 0x432   : > { %2741 = shalt.err (!%p2738_p7)
}
 0x433   : > { %s2898_s4 = smov 64   ;;  %s2899_s10 = smov 4  }
 0x434   : > { %2333 = dma.vmem_to_hbm [thread:$0]  (%p3669_p2), %s3484_s11, 1024, %s3482_s14, %s1479_s20, %s2898_s4, %s2898_s4, %s2899_s10  }
 0x435 PF: > { %p2370_p1 = scmp.ge.s32.totalorder %s2880_s18, 2  ;;  %s1523_s26 = sand.u32 1, %s2828_s27  }
 0x436   : > { %p3671_p13 = scmp.ne.s32.totalorder %s3648_s15, 0  ;;  %s1524_s24 = scalar_lea.sflag [#allocation5], %s1523_s26 }
 0x438   : > { %p2357_p6 = pnand %p2370_p1, %p3671_p13 }
 0x43a   : > { %2819 = dma.done.wait (!%p2357_p6), %s1524_s24, 2048  }
 0x43b   : > { %2821 = vsyncadd (!%p2357_p6), %s1524_s24, 4294965248  ;;  %s1533_s9 = scalar_lea.sflag [#allocation16], %s1523_s26 }
 0x43c   : > { %2823 = dma.done.wait (!%p2357_p6), %s1533_s9, 1024  }
 0x43d   : > { %2825 = vsyncadd (!%p2357_p6), %s1533_s9, 4294966272  ;;  %s33_s18 = sadd.s32 1, %s2880_s18   ;;  %s3673_s30 = sld [smem:[#allocation24_spill]] }
 0x43e   : > { %p3515_p11 = scmp.ge.s32.totalorder %s33_s18, 11   ;;  %s3674_s9 = sld [smem:[#allocation25_spill]] }
 0x43f   : > { %s3675_s10 = sld [smem:[#allocation31_spill]]  ;;  %s3676_s8 = sld [smem:[#allocation29_spill]] }
 0x440   : > { %s3677_s20 = sld [smem:[#allocation30_spill]]  ;;  %s3678_s27 = smov %s2832_s28 }
 0x441   : > { %s3679_s28 = smov %s2836_s29  ;;  %s3680_s29 = smov %s3265_s7 }
 0x442   : > { %s3681_s11 = smov %s2856_s12  ;;  %s3682_s12 = smov %s2860_s13 }
 0x443   : > { %s3683_s13 = smov %s3202_s21  ;;  %s3684_s14 = smov %s2872_s16 }
 0x444   : > { %s3685_s15 = smov %s2876_s17  ;;  %32 = sbr.rel (!%p3515_p11) target bundleno = 25 (0x19), region = 154 }
 0x445   : > { %s3686_s16 = smov %s3676_s8 }
 0x446   : > { %s3687_s17 = smov %s3677_s20 }
 0x44b   :  { %1538 = vsyncpa [#allocation4], 1 }
 0x44c   :  { %1540 = vsyncpa [#allocation4 + $0x1], 1 }
 0x44d   :  { %1541 = vsyncpa [#allocation7], 1 }
 0x44e   :  { %1543 = vsyncpa [#allocation7 + $0x1], 1 }
 0x44f   :  { %1544 = vsyncpa [#allocation10], 1 }
 0x450   :  { %1545 = vsyncpa [#allocation13], 1 }
 0x451   :  { %1546 = vsyncpa [#allocation5], 1 }
 0x452   :  { %1548 = vsyncpa [#allocation5 + $0x1], 1 }
 0x453   :  { %1549 = vsyncpa [#allocation16], 1 }
 0x454   :  { %1551 = vsyncpa [#allocation16 + $0x1], 1 }

</bundles_post_ra>
